<compile_context>
chip_gen: v5e
topology: v5e:2x2
jax: 0.10.0
libtpu: 0.0.40
codegen_flags: <defaults>
</compile_context>

<pallas_src>
import functools

import jax
import jax.numpy as jnp
from jax.experimental import pallas as pl
from jax.experimental.pallas import tpu as pltpu

_VMEM_LIMIT = 48 * 1024 * 1024  # <= v7x 64 MiB, <= v5e/v6e 128 MiB


def _round_up(x, m):
    return (x + m - 1) // m * m


# ---------------------------------------------------------------------------
# Fused 3x3 "valid" conv + bias + ReLU + 2x2 stride-2 max-pool
# One grid step = one pooled output row of one image.
# ---------------------------------------------------------------------------
def _conv3x3_relu_pool_kernel(x_ref, w_ref, b_ref, o_ref, row_scr,
                              *, cout, wo, wp, use_mxu):
    hp = pl.program_id(1)        # pooled output row index
    r0 = 2 * hp                  # first of the two conv rows feeding this pooled row
    bias = b_ref[...]            # (1, cout) f32

    def conv_row(r):
        acc = jnp.zeros((wo, cout), jnp.float32)
        for di in range(3):
            for dj in range(3):
                k = di * 3 + dj
                xs = x_ref[0, r + di, pl.ds(dj, wo), :]   # (wo, cin) shifted window
                wk = w_ref[k]                             # (cin, cout)
                if use_mxu:
                    acc = acc + jnp.dot(xs, wk, preferred_element_type=jnp.float32)
                else:
                    # cin == 1: VPU broadcast multiply-accumulate (skip the MXU)
                    acc = acc + xs.astype(jnp.float32) * wk.astype(jnp.float32)
        return jnp.maximum(acc + bias, 0.0)               # bias + ReLU in f32

    # vertical 2-max of the two conv rows (f32)
    v = jnp.maximum(conv_row(r0), conv_row(r0 + 1))       # (wo, cout)
    # horizontal 2-max via stride-2 reads from VMEM scratch
    row_scr[...] = v
    pooled = jnp.maximum(row_scr[pl.ds(0, wp, 2), :],
                         row_scr[pl.ds(1, wp, 2), :])     # (wp, cout)
    o_ref[0, 0, :, :] = pooled.astype(o_ref.dtype)


def conv3x3_relu_pool(x_nhwc, w9, bias, *, out_dtype):
    B, H, W, Cin = x_nhwc.shape
    Cout = w9.shape[-1]
    Ho, Wo = H - 2, W - 2
    Hp, Wp = Ho // 2, Wo // 2
    use_mxu = Cin >= 8
    assert use_mxu or Cin == 1
    kernel = functools.partial(_conv3x3_relu_pool_kernel,
                               cout=Cout, wo=Wo, wp=Wp, use_mxu=use_mxu)
    return pl.pallas_call(
        kernel,
        out_shape=jax.ShapeDtypeStruct((B, Hp, Wp, Cout), out_dtype),
        grid=(B, Hp),
        in_specs=[
            # whole image resident in VMEM across the (inner) row axis
            pl.BlockSpec((1, H, W, Cin), lambda b, hp: (b, 0, 0, 0)),
            pl.BlockSpec((9, Cin, Cout), lambda b, hp: (0, 0, 0)),
            pl.BlockSpec((1, Cout), lambda b, hp: (0, 0)),
        ],
        out_specs=pl.BlockSpec((1, 1, Wp, Cout), lambda b, hp: (b, hp, 0, 0)),
        scratch_shapes=[pltpu.VMEM((Wo, Cout), jnp.float32)],
        compiler_params=pltpu.CompilerParams(
            dimension_semantics=("parallel", "arbitrary"),
            vmem_limit_bytes=_VMEM_LIMIT,
        ),
    )(x_nhwc, w9, bias)


# ---------------------------------------------------------------------------
# Fused fc1 (+ReLU) + fc2, tiled over batch rows, fc2 N padded to 128 lanes.
# ---------------------------------------------------------------------------
def _fc_fused_kernel(x_ref, w1_ref, b1_ref, w2_ref, b2_ref, o_ref):
    h = jnp.dot(x_ref[...], w1_ref[...], preferred_element_type=jnp.float32)
    h = jnp.maximum(h + b1_ref[...], 0.0)                       # f32 epilogue
    o = jnp.dot(h.astype(jnp.bfloat16), w2_ref[...], preferred_element_type=jnp.float32)
    o_ref[...] = o + b2_ref[...]


def fc_fused(feat, w1, b1, w2, b2, *, tm_max=256):
    B, K = feat.shape
    N1 = w1.shape[1]
    N2 = w2.shape[1]
    TM = min(tm_max, _round_up(B, 16))
    Bp = _round_up(B, TM)
    if Bp != B:
        feat = jnp.pad(feat, ((0, Bp - B), (0, 0)))
    out = pl.pallas_call(
        _fc_fused_kernel,
        out_shape=jax.ShapeDtypeStruct((Bp, N2), jnp.float32),
        grid=(Bp // TM,),
        in_specs=[
            pl.BlockSpec((TM, K), lambda i: (i, 0)),
            pl.BlockSpec((K, N1), lambda i: (0, 0)),
            pl.BlockSpec((1, N1), lambda i: (0, 0)),
            pl.BlockSpec((N1, N2), lambda i: (0, 0)),
            pl.BlockSpec((1, N2), lambda i: (0, 0)),
        ],
        out_specs=pl.BlockSpec((TM, N2), lambda i: (i, 0)),
        compiler_params=pltpu.CompilerParams(
            dimension_semantics=("parallel",),
            vmem_limit_bytes=_VMEM_LIMIT,
        ),
    )(feat, w1, b1, w2, b2)
    return out[:B]


# ---------------------------------------------------------------------------
# Parameter plumbing + full forward
# ---------------------------------------------------------------------------
def _prepare_params(params):
    # conv weights -> (kh*3+kw, Cin, Cout), matching the kernel's shift order
    w1 = jnp.transpose(params["w1"], (2, 3, 1, 0)).reshape(9, 1, 32).astype(jnp.float32)
    b1 = params["b1"].reshape(1, 32).astype(jnp.float32)
    w2 = jnp.transpose(params["w2"], (2, 3, 1, 0)).reshape(9, 32, 64).astype(jnp.bfloat16)
    b2 = params["b2"].reshape(1, 64).astype(jnp.float32)
    # fc1: permute the 1600 input features from PyTorch's (C,H,W) flatten order
    # to (H,W,C) so the NHWC flatten feeds it directly (no activation transpose).
    wf1 = params["wf1"].reshape(128, 64, 5, 5).transpose(0, 2, 3, 1).reshape(128, 1600)
    wf1 = wf1.T.astype(jnp.bfloat16)                     # (1600, 128)
    bf1 = params["bf1"].reshape(1, 128).astype(jnp.float32)
    # fc2: pad N from 10 -> 128 for lane-dense stores; wrapper slices [:, :10].
    wf2 = jnp.zeros((128, 128), jnp.float32).at[:, :10].set(params["wf2"].T)
    wf2 = wf2.astype(jnp.bfloat16)
    bf2 = jnp.zeros((1, 128), jnp.float32).at[0, :10].set(params["bf2"])
    return w1, b1, w2, b2, wf1, bf1, wf2, bf2


def number_cnn_forward(x_nchw, params):
    w1, b1, w2, b2, wf1, bf1, wf2, bf2 = _prepare_params(params)
    B = x_nchw.shape[0]
    x = jnp.transpose(x_nchw, (0, 2, 3, 1)).astype(jnp.float32)      # NHWC (B,28,28,1)
    y = conv3x3_relu_pool(x, w1, b1, out_dtype=jnp.bfloat16)         # (B,13,13,32)
    y = conv3x3_relu_pool(y, w2, b2, out_dtype=jnp.bfloat16)         # (B,5,5,64)
    feat = y.reshape(B, 5 * 5 * 64)                                  # NHWC flatten (matches permuted wf1)
    logits = fc_fused(feat, wf1, bf1, wf2, bf2)                      # (B,128) padded
    return logits[:, :10]


# ---------------------------------------------------------------------------
# Pure-JAX reference (for correctness check)
# ---------------------------------------------------------------------------
def reference_forward(x_nchw, params):
    dn = ("NCHW", "OIHW", "NCHW")
    y = jax.lax.conv_general_dilated(x_nchw, params["w1"], (1, 1), "VALID", dimension_numbers=dn)
    y = jax.nn.relu(y + params["b1"][None, :, None, None])
    y = jax.lax.reduce_window(y, -jnp.inf, jax.lax.max, (1, 1, 2, 2), (1, 1, 2, 2), "VALID")
    y = jax.lax.conv_general_dilated(y, params["w2"], (1, 1), "VALID", dimension_numbers=dn)
    y = jax.nn.relu(y + params["b2"][None, :, None, None])
    y = jax.lax.reduce_window(y, -jnp.inf, jax.lax.max, (1, 1, 2, 2), (1, 1, 2, 2), "VALID")
    feat = y.reshape(y.shape[0], -1)
    h = jax.nn.relu(feat @ params["wf1"].T + params["bf1"])
    return h @ params["wf2"].T + params["bf2"]


# ---------------------------------------------------------------------------
if __name__ == "__main__":
    key = jax.random.PRNGKey(0)
    ks = jax.random.split(key, 9)

    # Deterministic synthetic parameters (shapes from NumberCNN.__init__)
    params = {
        "w1": jax.random.normal(ks[0], (32, 1, 3, 3), jnp.float32) * 0.1,
        "b1": jax.random.normal(ks[1], (32,), jnp.float32) * 0.1,
        "w2": jax.random.normal(ks[2], (64, 32, 3, 3), jnp.float32) * 0.05,
        "b2": jax.random.normal(ks[3], (64,), jnp.float32) * 0.1,
        "wf1": jax.random.normal(ks[4], (128, 64 * 5 * 5), jnp.float32) * 0.02,
        "bf1": jax.random.normal(ks[5], (128,), jnp.float32) * 0.1,
        "wf2": jax.random.normal(ks[6], (10, 128), jnp.float32) * 0.05,
        "bf2": jax.random.normal(ks[7], (10,), jnp.float32) * 0.1,
    }

    # Input must be 28x28 for fc1's 64*5*5 feature size (conv/pool arithmetic).
    x = jax.random.normal(ks[8], (2, 1, 28, 28), jnp.float32)

    fwd = jax.jit(number_cnn_forward)
    out = jax.block_until_ready(fwd(x, params))
    ref = jax.block_until_ready(reference_forward(x, params))

    err = float(jnp.max(jnp.abs(out - ref)))
    assert out.shape == (2, 10), out.shape
    # bf16 MXU inputs with f32 accumulation: tolerance relaxed from 2e-3 to 2e-2.
    assert err < 2e-2, f"max abs error {err}"

    print("KERNEL_OK")
</pallas_src>

<mosaic_0001>
module attributes {stable_mosaic.version = 11 : i64} {
  func.func @_conv3x3_relu_pool_kernel(%arg0: i32, %arg1: i32, %arg2: memref<1x28x28x1xf32, #tpu.memory_space<vmem>>, %arg3: memref<9x1x32xf32, #tpu.memory_space<vmem>>, %arg4: memref<1x32xf32, #tpu.memory_space<vmem>>, %arg5: memref<1x1x13x32xbf16, #tpu.memory_space<vmem>>, %arg6: memref<26x32xf32, #tpu.memory_space<vmem>>) attributes {dimension_semantics = [#tpu.dimension_semantics<parallel>, #tpu.dimension_semantics<arbitrary>], iteration_bounds = array<i64: 2, 13>, scalar_prefetch = 0 : i64, scratch_operands = 1 : i64, tpu.core_type = #tpu.core_type<tc>, window_params = [{transform_indices = @transform_0, window_bounds = array<i64: 1, 28, 28, 1>}, {pipeline_mode = #tpu.pipeline_mode<synchronous>, transform_indices = @transform_1, window_bounds = array<i64: 9, 1, 32>}, {pipeline_mode = #tpu.pipeline_mode<synchronous>, transform_indices = @transform_2, window_bounds = array<i64: 1, 32>}, {transform_indices = @transform_3, window_bounds = array<i64: 1, 1, 13, 32>}]} {
    %c2_i32 = arith.constant 2 : i32
    %0 = arith.muli %c2_i32, %arg1 : i32
    %c0 = arith.constant 0 : index
    %c0_0 = arith.constant 0 : index
    %1 = vector.load %arg4[%c0, %c0_0] : memref<1x32xf32, #tpu.memory_space<vmem>>, vector<1x32xf32>
    %cst = arith.constant 0.000000e+00 : f32
    %2 = vector.broadcast %cst : f32 to vector<26x32xf32>
    %c0_i32 = arith.constant 0 : i32
    %3 = arith.addi %0, %c0_i32 : i32
    %c0_1 = arith.constant 0 : index
    %4 = arith.index_cast %3 : i32 to index
    %c0_2 = arith.constant 0 : index
    %c0_3 = arith.constant 0 : index
    %5 = vector.load %arg2[%c0_1, %4, %c0_2, %c0_3] : memref<1x28x28x1xf32, #tpu.memory_space<vmem>>, vector<1x1x26x1xf32>
    %6 = vector.shape_cast %5 : vector<1x1x26x1xf32> to vector<26x1xf32>
    %c0_4 = arith.constant 0 : index
    %c0_5 = arith.constant 0 : index
    %c0_6 = arith.constant 0 : index
    %7 = vector.load %arg3[%c0_4, %c0_5, %c0_6] : memref<9x1x32xf32, #tpu.memory_space<vmem>>, vector<1x1x32xf32>
    %8 = vector.shape_cast %7 : vector<1x1x32xf32> to vector<1x32xf32>
    %9 = vector.broadcast %6 : vector<26x1xf32> to vector<26x32xf32>
    %10 = vector.broadcast %8 : vector<1x32xf32> to vector<26x32xf32>
    %11 = arith.mulf %9, %10 : vector<26x32xf32>
    %12 = arith.addf %2, %11 : vector<26x32xf32>
    %c0_i32_7 = arith.constant 0 : i32
    %13 = arith.addi %0, %c0_i32_7 : i32
    %c0_8 = arith.constant 0 : index
    %14 = arith.index_cast %13 : i32 to index
    %c1 = arith.constant 1 : index
    %c0_9 = arith.constant 0 : index
    %15 = vector.load %arg2[%c0_8, %14, %c1, %c0_9] : memref<1x28x28x1xf32, #tpu.memory_space<vmem>>, vector<1x1x26x1xf32>
    %16 = vector.shape_cast %15 : vector<1x1x26x1xf32> to vector<26x1xf32>
    %c1_10 = arith.constant 1 : index
    %c0_11 = arith.constant 0 : index
    %c0_12 = arith.constant 0 : index
    %17 = vector.load %arg3[%c1_10, %c0_11, %c0_12] : memref<9x1x32xf32, #tpu.memory_space<vmem>>, vector<1x1x32xf32>
    %18 = vector.shape_cast %17 : vector<1x1x32xf32> to vector<1x32xf32>
    %19 = vector.broadcast %16 : vector<26x1xf32> to vector<26x32xf32>
    %20 = vector.broadcast %18 : vector<1x32xf32> to vector<26x32xf32>
    %21 = arith.mulf %19, %20 : vector<26x32xf32>
    %22 = arith.addf %12, %21 : vector<26x32xf32>
    %c0_i32_13 = arith.constant 0 : i32
    %23 = arith.addi %0, %c0_i32_13 : i32
    %c0_14 = arith.constant 0 : index
    %24 = arith.index_cast %23 : i32 to index
    %c2 = arith.constant 2 : index
    %c0_15 = arith.constant 0 : index
    %25 = vector.load %arg2[%c0_14, %24, %c2, %c0_15] : memref<1x28x28x1xf32, #tpu.memory_space<vmem>>, vector<1x1x26x1xf32>
    %26 = vector.shape_cast %25 : vector<1x1x26x1xf32> to vector<26x1xf32>
    %c2_16 = arith.constant 2 : index
    %c0_17 = arith.constant 0 : index
    %c0_18 = arith.constant 0 : index
    %27 = vector.load %arg3[%c2_16, %c0_17, %c0_18] : memref<9x1x32xf32, #tpu.memory_space<vmem>>, vector<1x1x32xf32>
    %28 = vector.shape_cast %27 : vector<1x1x32xf32> to vector<1x32xf32>
    %29 = vector.broadcast %26 : vector<26x1xf32> to vector<26x32xf32>
    %30 = vector.broadcast %28 : vector<1x32xf32> to vector<26x32xf32>
    %31 = arith.mulf %29, %30 : vector<26x32xf32>
    %32 = arith.addf %22, %31 : vector<26x32xf32>
    %c1_i32 = arith.constant 1 : i32
    %33 = arith.addi %0, %c1_i32 : i32
    %c0_19 = arith.constant 0 : index
    %34 = arith.index_cast %33 : i32 to index
    %c0_20 = arith.constant 0 : index
    %c0_21 = arith.constant 0 : index
    %35 = vector.load %arg2[%c0_19, %34, %c0_20, %c0_21] : memref<1x28x28x1xf32, #tpu.memory_space<vmem>>, vector<1x1x26x1xf32>
    %36 = vector.shape_cast %35 : vector<1x1x26x1xf32> to vector<26x1xf32>
    %c3 = arith.constant 3 : index
    %c0_22 = arith.constant 0 : index
    %c0_23 = arith.constant 0 : index
    %37 = vector.load %arg3[%c3, %c0_22, %c0_23] : memref<9x1x32xf32, #tpu.memory_space<vmem>>, vector<1x1x32xf32>
    %38 = vector.shape_cast %37 : vector<1x1x32xf32> to vector<1x32xf32>
    %39 = vector.broadcast %36 : vector<26x1xf32> to vector<26x32xf32>
    %40 = vector.broadcast %38 : vector<1x32xf32> to vector<26x32xf32>
    %41 = arith.mulf %39, %40 : vector<26x32xf32>
    %42 = arith.addf %32, %41 : vector<26x32xf32>
    %c1_i32_24 = arith.constant 1 : i32
    %43 = arith.addi %0, %c1_i32_24 : i32
    %c0_25 = arith.constant 0 : index
    %44 = arith.index_cast %43 : i32 to index
    %c1_26 = arith.constant 1 : index
    %c0_27 = arith.constant 0 : index
    %45 = vector.load %arg2[%c0_25, %44, %c1_26, %c0_27] : memref<1x28x28x1xf32, #tpu.memory_space<vmem>>, vector<1x1x26x1xf32>
    %46 = vector.shape_cast %45 : vector<1x1x26x1xf32> to vector<26x1xf32>
    %c4 = arith.constant 4 : index
    %c0_28 = arith.constant 0 : index
    %c0_29 = arith.constant 0 : index
    %47 = vector.load %arg3[%c4, %c0_28, %c0_29] : memref<9x1x32xf32, #tpu.memory_space<vmem>>, vector<1x1x32xf32>
    %48 = vector.shape_cast %47 : vector<1x1x32xf32> to vector<1x32xf32>
    %49 = vector.broadcast %46 : vector<26x1xf32> to vector<26x32xf32>
    %50 = vector.broadcast %48 : vector<1x32xf32> to vector<26x32xf32>
    %51 = arith.mulf %49, %50 : vector<26x32xf32>
    %52 = arith.addf %42, %51 : vector<26x32xf32>
    %c1_i32_30 = arith.constant 1 : i32
    %53 = arith.addi %0, %c1_i32_30 : i32
    %c0_31 = arith.constant 0 : index
    %54 = arith.index_cast %53 : i32 to index
    %c2_32 = arith.constant 2 : index
    %c0_33 = arith.constant 0 : index
    %55 = vector.load %arg2[%c0_31, %54, %c2_32, %c0_33] : memref<1x28x28x1xf32, #tpu.memory_space<vmem>>, vector<1x1x26x1xf32>
    %56 = vector.shape_cast %55 : vector<1x1x26x1xf32> to vector<26x1xf32>
    %c5 = arith.constant 5 : index
    %c0_34 = arith.constant 0 : index
    %c0_35 = arith.constant 0 : index
    %57 = vector.load %arg3[%c5, %c0_34, %c0_35] : memref<9x1x32xf32, #tpu.memory_space<vmem>>, vector<1x1x32xf32>
    %58 = vector.shape_cast %57 : vector<1x1x32xf32> to vector<1x32xf32>
    %59 = vector.broadcast %56 : vector<26x1xf32> to vector<26x32xf32>
    %60 = vector.broadcast %58 : vector<1x32xf32> to vector<26x32xf32>
    %61 = arith.mulf %59, %60 : vector<26x32xf32>
    %62 = arith.addf %52, %61 : vector<26x32xf32>
    %c2_i32_36 = arith.constant 2 : i32
    %63 = arith.addi %0, %c2_i32_36 : i32
    %c0_37 = arith.constant 0 : index
    %64 = arith.index_cast %63 : i32 to index
    %c0_38 = arith.constant 0 : index
    %c0_39 = arith.constant 0 : index
    %65 = vector.load %arg2[%c0_37, %64, %c0_38, %c0_39] : memref<1x28x28x1xf32, #tpu.memory_space<vmem>>, vector<1x1x26x1xf32>
    %66 = vector.shape_cast %65 : vector<1x1x26x1xf32> to vector<26x1xf32>
    %c6 = arith.constant 6 : index
    %c0_40 = arith.constant 0 : index
    %c0_41 = arith.constant 0 : index
    %67 = vector.load %arg3[%c6, %c0_40, %c0_41] : memref<9x1x32xf32, #tpu.memory_space<vmem>>, vector<1x1x32xf32>
    %68 = vector.shape_cast %67 : vector<1x1x32xf32> to vector<1x32xf32>
    %69 = vector.broadcast %66 : vector<26x1xf32> to vector<26x32xf32>
    %70 = vector.broadcast %68 : vector<1x32xf32> to vector<26x32xf32>
    %71 = arith.mulf %69, %70 : vector<26x32xf32>
    %72 = arith.addf %62, %71 : vector<26x32xf32>
    %c2_i32_42 = arith.constant 2 : i32
    %73 = arith.addi %0, %c2_i32_42 : i32
    %c0_43 = arith.constant 0 : index
    %74 = arith.index_cast %73 : i32 to index
    %c1_44 = arith.constant 1 : index
    %c0_45 = arith.constant 0 : index
    %75 = vector.load %arg2[%c0_43, %74, %c1_44, %c0_45] : memref<1x28x28x1xf32, #tpu.memory_space<vmem>>, vector<1x1x26x1xf32>
    %76 = vector.shape_cast %75 : vector<1x1x26x1xf32> to vector<26x1xf32>
    %c7 = arith.constant 7 : index
    %c0_46 = arith.constant 0 : index
    %c0_47 = arith.constant 0 : index
    %77 = vector.load %arg3[%c7, %c0_46, %c0_47] : memref<9x1x32xf32, #tpu.memory_space<vmem>>, vector<1x1x32xf32>
    %78 = vector.shape_cast %77 : vector<1x1x32xf32> to vector<1x32xf32>
    %79 = vector.broadcast %76 : vector<26x1xf32> to vector<26x32xf32>
    %80 = vector.broadcast %78 : vector<1x32xf32> to vector<26x32xf32>
    %81 = arith.mulf %79, %80 : vector<26x32xf32>
    %82 = arith.addf %72, %81 : vector<26x32xf32>
    %c2_i32_48 = arith.constant 2 : i32
    %83 = arith.addi %0, %c2_i32_48 : i32
    %c0_49 = arith.constant 0 : index
    %84 = arith.index_cast %83 : i32 to index
    %c2_50 = arith.constant 2 : index
    %c0_51 = arith.constant 0 : index
    %85 = vector.load %arg2[%c0_49, %84, %c2_50, %c0_51] : memref<1x28x28x1xf32, #tpu.memory_space<vmem>>, vector<1x1x26x1xf32>
    %86 = vector.shape_cast %85 : vector<1x1x26x1xf32> to vector<26x1xf32>
    %c8 = arith.constant 8 : index
    %c0_52 = arith.constant 0 : index
    %c0_53 = arith.constant 0 : index
    %87 = vector.load %arg3[%c8, %c0_52, %c0_53] : memref<9x1x32xf32, #tpu.memory_space<vmem>>, vector<1x1x32xf32>
    %88 = vector.shape_cast %87 : vector<1x1x32xf32> to vector<1x32xf32>
    %89 = vector.broadcast %86 : vector<26x1xf32> to vector<26x32xf32>
    %90 = vector.broadcast %88 : vector<1x32xf32> to vector<26x32xf32>
    %91 = arith.mulf %89, %90 : vector<26x32xf32>
    %92 = arith.addf %82, %91 : vector<26x32xf32>
    %93 = vector.broadcast %1 : vector<1x32xf32> to vector<26x32xf32>
    %94 = arith.addf %92, %93 : vector<26x32xf32>
    %cst_54 = arith.constant 0.000000e+00 : f32
    %95 = vector.broadcast %cst_54 : f32 to vector<26x32xf32>
    %96 = arith.maximumf %94, %95 : vector<26x32xf32>
    %c1_i32_55 = arith.constant 1 : i32
    %97 = arith.addi %0, %c1_i32_55 : i32
    %cst_56 = arith.constant 0.000000e+00 : f32
    %98 = vector.broadcast %cst_56 : f32 to vector<26x32xf32>
    %c0_i32_57 = arith.constant 0 : i32
    %99 = arith.addi %97, %c0_i32_57 : i32
    %c0_58 = arith.constant 0 : index
    %100 = arith.index_cast %99 : i32 to index
    %c0_59 = arith.constant 0 : index
    %c0_60 = arith.constant 0 : index
    %101 = vector.load %arg2[%c0_58, %100, %c0_59, %c0_60] : memref<1x28x28x1xf32, #tpu.memory_space<vmem>>, vector<1x1x26x1xf32>
    %102 = vector.shape_cast %101 : vector<1x1x26x1xf32> to vector<26x1xf32>
    %c0_61 = arith.constant 0 : index
    %c0_62 = arith.constant 0 : index
    %c0_63 = arith.constant 0 : index
    %103 = vector.load %arg3[%c0_61, %c0_62, %c0_63] : memref<9x1x32xf32, #tpu.memory_space<vmem>>, vector<1x1x32xf32>
    %104 = vector.shape_cast %103 : vector<1x1x32xf32> to vector<1x32xf32>
    %105 = vector.broadcast %102 : vector<26x1xf32> to vector<26x32xf32>
    %106 = vector.broadcast %104 : vector<1x32xf32> to vector<26x32xf32>
    %107 = arith.mulf %105, %106 : vector<26x32xf32>
    %108 = arith.addf %98, %107 : vector<26x32xf32>
    %c0_i32_64 = arith.constant 0 : i32
    %109 = arith.addi %97, %c0_i32_64 : i32
    %c0_65 = arith.constant 0 : index
    %110 = arith.index_cast %109 : i32 to index
    %c1_66 = arith.constant 1 : index
    %c0_67 = arith.constant 0 : index
    %111 = vector.load %arg2[%c0_65, %110, %c1_66, %c0_67] : memref<1x28x28x1xf32, #tpu.memory_space<vmem>>, vector<1x1x26x1xf32>
    %112 = vector.shape_cast %111 : vector<1x1x26x1xf32> to vector<26x1xf32>
    %c1_68 = arith.constant 1 : index
    %c0_69 = arith.constant 0 : index
    %c0_70 = arith.constant 0 : index
    %113 = vector.load %arg3[%c1_68, %c0_69, %c0_70] : memref<9x1x32xf32, #tpu.memory_space<vmem>>, vector<1x1x32xf32>
    %114 = vector.shape_cast %113 : vector<1x1x32xf32> to vector<1x32xf32>
    %115 = vector.broadcast %112 : vector<26x1xf32> to vector<26x32xf32>
    %116 = vector.broadcast %114 : vector<1x32xf32> to vector<26x32xf32>
    %117 = arith.mulf %115, %116 : vector<26x32xf32>
    %118 = arith.addf %108, %117 : vector<26x32xf32>
    %c0_i32_71 = arith.constant 0 : i32
    %119 = arith.addi %97, %c0_i32_71 : i32
    %c0_72 = arith.constant 0 : index
    %120 = arith.index_cast %119 : i32 to index
    %c2_73 = arith.constant 2 : index
    %c0_74 = arith.constant 0 : index
    %121 = vector.load %arg2[%c0_72, %120, %c2_73, %c0_74] : memref<1x28x28x1xf32, #tpu.memory_space<vmem>>, vector<1x1x26x1xf32>
    %122 = vector.shape_cast %121 : vector<1x1x26x1xf32> to vector<26x1xf32>
    %c2_75 = arith.constant 2 : index
    %c0_76 = arith.constant 0 : index
    %c0_77 = arith.constant 0 : index
    %123 = vector.load %arg3[%c2_75, %c0_76, %c0_77] : memref<9x1x32xf32, #tpu.memory_space<vmem>>, vector<1x1x32xf32>
    %124 = vector.shape_cast %123 : vector<1x1x32xf32> to vector<1x32xf32>
    %125 = vector.broadcast %122 : vector<26x1xf32> to vector<26x32xf32>
    %126 = vector.broadcast %124 : vector<1x32xf32> to vector<26x32xf32>
    %127 = arith.mulf %125, %126 : vector<26x32xf32>
    %128 = arith.addf %118, %127 : vector<26x32xf32>
    %c1_i32_78 = arith.constant 1 : i32
    %129 = arith.addi %97, %c1_i32_78 : i32
    %c0_79 = arith.constant 0 : index
    %130 = arith.index_cast %129 : i32 to index
    %c0_80 = arith.constant 0 : index
    %c0_81 = arith.constant 0 : index
    %131 = vector.load %arg2[%c0_79, %130, %c0_80, %c0_81] : memref<1x28x28x1xf32, #tpu.memory_space<vmem>>, vector<1x1x26x1xf32>
    %132 = vector.shape_cast %131 : vector<1x1x26x1xf32> to vector<26x1xf32>
    %c3_82 = arith.constant 3 : index
    %c0_83 = arith.constant 0 : index
    %c0_84 = arith.constant 0 : index
    %133 = vector.load %arg3[%c3_82, %c0_83, %c0_84] : memref<9x1x32xf32, #tpu.memory_space<vmem>>, vector<1x1x32xf32>
    %134 = vector.shape_cast %133 : vector<1x1x32xf32> to vector<1x32xf32>
    %135 = vector.broadcast %132 : vector<26x1xf32> to vector<26x32xf32>
    %136 = vector.broadcast %134 : vector<1x32xf32> to vector<26x32xf32>
    %137 = arith.mulf %135, %136 : vector<26x32xf32>
    %138 = arith.addf %128, %137 : vector<26x32xf32>
    %c1_i32_85 = arith.constant 1 : i32
    %139 = arith.addi %97, %c1_i32_85 : i32
    %c0_86 = arith.constant 0 : index
    %140 = arith.index_cast %139 : i32 to index
    %c1_87 = arith.constant 1 : index
    %c0_88 = arith.constant 0 : index
    %141 = vector.load %arg2[%c0_86, %140, %c1_87, %c0_88] : memref<1x28x28x1xf32, #tpu.memory_space<vmem>>, vector<1x1x26x1xf32>
    %142 = vector.shape_cast %141 : vector<1x1x26x1xf32> to vector<26x1xf32>
    %c4_89 = arith.constant 4 : index
    %c0_90 = arith.constant 0 : index
    %c0_91 = arith.constant 0 : index
    %143 = vector.load %arg3[%c4_89, %c0_90, %c0_91] : memref<9x1x32xf32, #tpu.memory_space<vmem>>, vector<1x1x32xf32>
    %144 = vector.shape_cast %143 : vector<1x1x32xf32> to vector<1x32xf32>
    %145 = vector.broadcast %142 : vector<26x1xf32> to vector<26x32xf32>
    %146 = vector.broadcast %144 : vector<1x32xf32> to vector<26x32xf32>
    %147 = arith.mulf %145, %146 : vector<26x32xf32>
    %148 = arith.addf %138, %147 : vector<26x32xf32>
    %c1_i32_92 = arith.constant 1 : i32
    %149 = arith.addi %97, %c1_i32_92 : i32
    %c0_93 = arith.constant 0 : index
    %150 = arith.index_cast %149 : i32 to index
    %c2_94 = arith.constant 2 : index
    %c0_95 = arith.constant 0 : index
    %151 = vector.load %arg2[%c0_93, %150, %c2_94, %c0_95] : memref<1x28x28x1xf32, #tpu.memory_space<vmem>>, vector<1x1x26x1xf32>
    %152 = vector.shape_cast %151 : vector<1x1x26x1xf32> to vector<26x1xf32>
    %c5_96 = arith.constant 5 : index
    %c0_97 = arith.constant 0 : index
    %c0_98 = arith.constant 0 : index
    %153 = vector.load %arg3[%c5_96, %c0_97, %c0_98] : memref<9x1x32xf32, #tpu.memory_space<vmem>>, vector<1x1x32xf32>
    %154 = vector.shape_cast %153 : vector<1x1x32xf32> to vector<1x32xf32>
    %155 = vector.broadcast %152 : vector<26x1xf32> to vector<26x32xf32>
    %156 = vector.broadcast %154 : vector<1x32xf32> to vector<26x32xf32>
    %157 = arith.mulf %155, %156 : vector<26x32xf32>
    %158 = arith.addf %148, %157 : vector<26x32xf32>
    %c2_i32_99 = arith.constant 2 : i32
    %159 = arith.addi %97, %c2_i32_99 : i32
    %c0_100 = arith.constant 0 : index
    %160 = arith.index_cast %159 : i32 to index
    %c0_101 = arith.constant 0 : index
    %c0_102 = arith.constant 0 : index
    %161 = vector.load %arg2[%c0_100, %160, %c0_101, %c0_102] : memref<1x28x28x1xf32, #tpu.memory_space<vmem>>, vector<1x1x26x1xf32>
    %162 = vector.shape_cast %161 : vector<1x1x26x1xf32> to vector<26x1xf32>
    %c6_103 = arith.constant 6 : index
    %c0_104 = arith.constant 0 : index
    %c0_105 = arith.constant 0 : index
    %163 = vector.load %arg3[%c6_103, %c0_104, %c0_105] : memref<9x1x32xf32, #tpu.memory_space<vmem>>, vector<1x1x32xf32>
    %164 = vector.shape_cast %163 : vector<1x1x32xf32> to vector<1x32xf32>
    %165 = vector.broadcast %162 : vector<26x1xf32> to vector<26x32xf32>
    %166 = vector.broadcast %164 : vector<1x32xf32> to vector<26x32xf32>
    %167 = arith.mulf %165, %166 : vector<26x32xf32>
    %168 = arith.addf %158, %167 : vector<26x32xf32>
    %c2_i32_106 = arith.constant 2 : i32
    %169 = arith.addi %97, %c2_i32_106 : i32
    %c0_107 = arith.constant 0 : index
    %170 = arith.index_cast %169 : i32 to index
    %c1_108 = arith.constant 1 : index
    %c0_109 = arith.constant 0 : index
    %171 = vector.load %arg2[%c0_107, %170, %c1_108, %c0_109] : memref<1x28x28x1xf32, #tpu.memory_space<vmem>>, vector<1x1x26x1xf32>
    %172 = vector.shape_cast %171 : vector<1x1x26x1xf32> to vector<26x1xf32>
    %c7_110 = arith.constant 7 : index
    %c0_111 = arith.constant 0 : index
    %c0_112 = arith.constant 0 : index
    %173 = vector.load %arg3[%c7_110, %c0_111, %c0_112] : memref<9x1x32xf32, #tpu.memory_space<vmem>>, vector<1x1x32xf32>
    %174 = vector.shape_cast %173 : vector<1x1x32xf32> to vector<1x32xf32>
    %175 = vector.broadcast %172 : vector<26x1xf32> to vector<26x32xf32>
    %176 = vector.broadcast %174 : vector<1x32xf32> to vector<26x32xf32>
    %177 = arith.mulf %175, %176 : vector<26x32xf32>
    %178 = arith.addf %168, %177 : vector<26x32xf32>
    %c2_i32_113 = arith.constant 2 : i32
    %179 = arith.addi %97, %c2_i32_113 : i32
    %c0_114 = arith.constant 0 : index
    %180 = arith.index_cast %179 : i32 to index
    %c2_115 = arith.constant 2 : index
    %c0_116 = arith.constant 0 : index
    %181 = vector.load %arg2[%c0_114, %180, %c2_115, %c0_116] : memref<1x28x28x1xf32, #tpu.memory_space<vmem>>, vector<1x1x26x1xf32>
    %182 = vector.shape_cast %181 : vector<1x1x26x1xf32> to vector<26x1xf32>
    %c8_117 = arith.constant 8 : index
    %c0_118 = arith.constant 0 : index
    %c0_119 = arith.constant 0 : index
    %183 = vector.load %arg3[%c8_117, %c0_118, %c0_119] : memref<9x1x32xf32, #tpu.memory_space<vmem>>, vector<1x1x32xf32>
    %184 = vector.shape_cast %183 : vector<1x1x32xf32> to vector<1x32xf32>
    %185 = vector.broadcast %182 : vector<26x1xf32> to vector<26x32xf32>
    %186 = vector.broadcast %184 : vector<1x32xf32> to vector<26x32xf32>
    %187 = arith.mulf %185, %186 : vector<26x32xf32>
    %188 = arith.addf %178, %187 : vector<26x32xf32>
    %189 = vector.broadcast %1 : vector<1x32xf32> to vector<26x32xf32>
    %190 = arith.addf %188, %189 : vector<26x32xf32>
    %cst_120 = arith.constant 0.000000e+00 : f32
    %191 = vector.broadcast %cst_120 : f32 to vector<26x32xf32>
    %192 = arith.maximumf %190, %191 : vector<26x32xf32>
    %193 = arith.maximumf %96, %192 : vector<26x32xf32>
    %c0_121 = arith.constant 0 : index
    %c0_122 = arith.constant 0 : index
    %194 = vector.load %arg6[%c0_121, %c0_122] : memref<26x32xf32, #tpu.memory_space<vmem>>, vector<26x32xf32>
    tpu.vector_store %arg6[%c0_121, %c0_122], %193 {strides = array<i32>} : memref<26x32xf32, #tpu.memory_space<vmem>>, vector<26x32xf32>,
    %c0_123 = arith.constant 0 : index
    %c0_124 = arith.constant 0 : index
    %195 = tpu.strided_load %arg6[%c0_123, %c0_124] {strides = array<i32: 2, 1>} : memref<26x32xf32, #tpu.memory_space<vmem>>, vector<13x32xf32>
    %c1_125 = arith.constant 1 : index
    %c0_126 = arith.constant 0 : index
    %196 = tpu.strided_load %arg6[%c1_125, %c0_126] {strides = array<i32: 2, 1>} : memref<26x32xf32, #tpu.memory_space<vmem>>, vector<13x32xf32>
    %197 = arith.maximumf %195, %196 : vector<13x32xf32>
    %198 = arith.truncf %197 : vector<13x32xf32> to vector<13x32xbf16>
    %c0_127 = arith.constant 0 : index
    %c0_128 = arith.constant 0 : index
    %c0_129 = arith.constant 0 : index
    %c0_130 = arith.constant 0 : index
    %199 = vector.load %arg5[%c0_127, %c0_128, %c0_129, %c0_130] : memref<1x1x13x32xbf16, #tpu.memory_space<vmem>>, vector<1x1x13x32xbf16>
    %200 = vector.shape_cast %199 : vector<1x1x13x32xbf16> to vector<13x32xbf16>
    %201 = vector.shape_cast %198 : vector<13x32xbf16> to vector<1x1x13x32xbf16>
    tpu.vector_store %arg5[%c0_127, %c0_128, %c0_129, %c0_130], %201 {strides = array<i32>} : memref<1x1x13x32xbf16, #tpu.memory_space<vmem>>, vector<1x1x13x32xbf16>,
    return
  }
  func.func @transform_0(%arg0: i32, %arg1: i32) -> (i32, i32, i32, i32) {
    %c0_i32 = arith.constant 0 : i32
    %c0_i32_0 = arith.constant 0 : i32
    %c0_i32_1 = arith.constant 0 : i32
    %c0_i32_2 = arith.constant 0 : i32
    return %arg0, %c0_i32, %c0_i32_0, %c0_i32_1 : i32, i32, i32, i32
  }
  func.func @transform_1(%arg0: i32, %arg1: i32) -> (i32, i32, i32) {
    %c0_i32 = arith.constant 0 : i32
    %c0_i32_0 = arith.constant 0 : i32
    %c0_i32_1 = arith.constant 0 : i32
    %c0_i32_2 = arith.constant 0 : i32
    return %c0_i32, %c0_i32_0, %c0_i32_1 : i32, i32, i32
  }
  func.func @transform_2(%arg0: i32, %arg1: i32) -> (i32, i32) {
    %c0_i32 = arith.constant 0 : i32
    %c0_i32_0 = arith.constant 0 : i32
    %c0_i32_1 = arith.constant 0 : i32
    return %c0_i32, %c0_i32_0 : i32, i32
  }
  func.func @transform_3(%arg0: i32, %arg1: i32) -> (i32, i32, i32, i32) {
    %c0_i32 = arith.constant 0 : i32
    %c0_i32_0 = arith.constant 0 : i32
    %c0_i32_1 = arith.constant 0 : i32
    return %arg0, %arg1, %c0_i32, %c0_i32_0 : i32, i32, i32, i32
  }
}

module attributes {stable_mosaic.version = 11 : i64} {
  func.func @_conv3x3_relu_pool_kernel(%arg0: i32, %arg1: i32, %arg2: memref<1x13x13x32xbf16, #tpu.memory_space<vmem>>, %arg3: memref<9x32x64xbf16, #tpu.memory_space<vmem>>, %arg4: memref<1x64xf32, #tpu.memory_space<vmem>>, %arg5: memref<1x1x5x64xbf16, #tpu.memory_space<vmem>>, %arg6: memref<11x64xf32, #tpu.memory_space<vmem>>) attributes {dimension_semantics = [#tpu.dimension_semantics<parallel>, #tpu.dimension_semantics<arbitrary>], iteration_bounds = array<i64: 2, 5>, scalar_prefetch = 0 : i64, scratch_operands = 1 : i64, tpu.core_type = #tpu.core_type<tc>, window_params = [{transform_indices = @transform_0, window_bounds = array<i64: 1, 13, 13, 32>}, {pipeline_mode = #tpu.pipeline_mode<synchronous>, transform_indices = @transform_1, window_bounds = array<i64: 9, 32, 64>}, {pipeline_mode = #tpu.pipeline_mode<synchronous>, transform_indices = @transform_2, window_bounds = array<i64: 1, 64>}, {transform_indices = @transform_3, window_bounds = array<i64: 1, 1, 5, 64>}]} {
    %c2_i32 = arith.constant 2 : i32
    %0 = arith.muli %c2_i32, %arg1 : i32
    %c0 = arith.constant 0 : index
    %c0_0 = arith.constant 0 : index
    %1 = vector.load %arg4[%c0, %c0_0] : memref<1x64xf32, #tpu.memory_space<vmem>>, vector<1x64xf32>
    %cst = arith.constant 0.000000e+00 : f32
    %2 = vector.broadcast %cst : f32 to vector<11x64xf32>
    %c0_i32 = arith.constant 0 : i32
    %3 = arith.addi %0, %c0_i32 : i32
    %c0_1 = arith.constant 0 : index
    %4 = arith.index_cast %3 : i32 to index
    %c0_2 = arith.constant 0 : index
    %c0_3 = arith.constant 0 : index
    %5 = vector.load %arg2[%c0_1, %4, %c0_2, %c0_3] : memref<1x13x13x32xbf16, #tpu.memory_space<vmem>>, vector<1x1x11x32xbf16>
    %6 = vector.shape_cast %5 : vector<1x1x11x32xbf16> to vector<11x32xbf16>
    %c0_4 = arith.constant 0 : index
    %c0_5 = arith.constant 0 : index
    %c0_6 = arith.constant 0 : index
    %7 = vector.load %arg3[%c0_4, %c0_5, %c0_6] : memref<9x32x64xbf16, #tpu.memory_space<vmem>>, vector<1x32x64xbf16>
    %8 = vector.shape_cast %7 : vector<1x32x64xbf16> to vector<32x64xbf16>
    %cst_7 = arith.constant dense<0.000000e+00> : vector<11x64xf32>
    %9 = tpu.matmul %6, %8, %cst_7 {dimension_numbers = #tpu.dot_dimension_numbers<[1], [0], [0], [1], [0, 0, 1, 1], [], []>} : vector<11x32xbf16>, vector<32x64xbf16>, vector<11x64xf32> -> vector<11x64xf32>
    %10 = arith.addf %2, %9 : vector<11x64xf32>
    %c0_i32_8 = arith.constant 0 : i32
    %11 = arith.addi %0, %c0_i32_8 : i32
    %c0_9 = arith.constant 0 : index
    %12 = arith.index_cast %11 : i32 to index
    %c1 = arith.constant 1 : index
    %c0_10 = arith.constant 0 : index
    %13 = vector.load %arg2[%c0_9, %12, %c1, %c0_10] : memref<1x13x13x32xbf16, #tpu.memory_space<vmem>>, vector<1x1x11x32xbf16>
    %14 = vector.shape_cast %13 : vector<1x1x11x32xbf16> to vector<11x32xbf16>
    %c1_11 = arith.constant 1 : index
    %c0_12 = arith.constant 0 : index
    %c0_13 = arith.constant 0 : index
    %15 = vector.load %arg3[%c1_11, %c0_12, %c0_13] : memref<9x32x64xbf16, #tpu.memory_space<vmem>>, vector<1x32x64xbf16>
    %16 = vector.shape_cast %15 : vector<1x32x64xbf16> to vector<32x64xbf16>
    %cst_14 = arith.constant dense<0.000000e+00> : vector<11x64xf32>
    %17 = tpu.matmul %14, %16, %cst_14 {dimension_numbers = #tpu.dot_dimension_numbers<[1], [0], [0], [1], [0, 0, 1, 1], [], []>} : vector<11x32xbf16>, vector<32x64xbf16>, vector<11x64xf32> -> vector<11x64xf32>
    %18 = arith.addf %10, %17 : vector<11x64xf32>
    %c0_i32_15 = arith.constant 0 : i32
    %19 = arith.addi %0, %c0_i32_15 : i32
    %c0_16 = arith.constant 0 : index
    %20 = arith.index_cast %19 : i32 to index
    %c2 = arith.constant 2 : index
    %c0_17 = arith.constant 0 : index
    %21 = vector.load %arg2[%c0_16, %20, %c2, %c0_17] : memref<1x13x13x32xbf16, #tpu.memory_space<vmem>>, vector<1x1x11x32xbf16>
    %22 = vector.shape_cast %21 : vector<1x1x11x32xbf16> to vector<11x32xbf16>
    %c2_18 = arith.constant 2 : index
    %c0_19 = arith.constant 0 : index
    %c0_20 = arith.constant 0 : index
    %23 = vector.load %arg3[%c2_18, %c0_19, %c0_20] : memref<9x32x64xbf16, #tpu.memory_space<vmem>>, vector<1x32x64xbf16>
    %24 = vector.shape_cast %23 : vector<1x32x64xbf16> to vector<32x64xbf16>
    %cst_21 = arith.constant dense<0.000000e+00> : vector<11x64xf32>
    %25 = tpu.matmul %22, %24, %cst_21 {dimension_numbers = #tpu.dot_dimension_numbers<[1], [0], [0], [1], [0, 0, 1, 1], [], []>} : vector<11x32xbf16>, vector<32x64xbf16>, vector<11x64xf32> -> vector<11x64xf32>
    %26 = arith.addf %18, %25 : vector<11x64xf32>
    %c1_i32 = arith.constant 1 : i32
    %27 = arith.addi %0, %c1_i32 : i32
    %c0_22 = arith.constant 0 : index
    %28 = arith.index_cast %27 : i32 to index
    %c0_23 = arith.constant 0 : index
    %c0_24 = arith.constant 0 : index
    %29 = vector.load %arg2[%c0_22, %28, %c0_23, %c0_24] : memref<1x13x13x32xbf16, #tpu.memory_space<vmem>>, vector<1x1x11x32xbf16>
    %30 = vector.shape_cast %29 : vector<1x1x11x32xbf16> to vector<11x32xbf16>
    %c3 = arith.constant 3 : index
    %c0_25 = arith.constant 0 : index
    %c0_26 = arith.constant 0 : index
    %31 = vector.load %arg3[%c3, %c0_25, %c0_26] : memref<9x32x64xbf16, #tpu.memory_space<vmem>>, vector<1x32x64xbf16>
    %32 = vector.shape_cast %31 : vector<1x32x64xbf16> to vector<32x64xbf16>
    %cst_27 = arith.constant dense<0.000000e+00> : vector<11x64xf32>
    %33 = tpu.matmul %30, %32, %cst_27 {dimension_numbers = #tpu.dot_dimension_numbers<[1], [0], [0], [1], [0, 0, 1, 1], [], []>} : vector<11x32xbf16>, vector<32x64xbf16>, vector<11x64xf32> -> vector<11x64xf32>
    %34 = arith.addf %26, %33 : vector<11x64xf32>
    %c1_i32_28 = arith.constant 1 : i32
    %35 = arith.addi %0, %c1_i32_28 : i32
    %c0_29 = arith.constant 0 : index
    %36 = arith.index_cast %35 : i32 to index
    %c1_30 = arith.constant 1 : index
    %c0_31 = arith.constant 0 : index
    %37 = vector.load %arg2[%c0_29, %36, %c1_30, %c0_31] : memref<1x13x13x32xbf16, #tpu.memory_space<vmem>>, vector<1x1x11x32xbf16>
    %38 = vector.shape_cast %37 : vector<1x1x11x32xbf16> to vector<11x32xbf16>
    %c4 = arith.constant 4 : index
    %c0_32 = arith.constant 0 : index
    %c0_33 = arith.constant 0 : index
    %39 = vector.load %arg3[%c4, %c0_32, %c0_33] : memref<9x32x64xbf16, #tpu.memory_space<vmem>>, vector<1x32x64xbf16>
    %40 = vector.shape_cast %39 : vector<1x32x64xbf16> to vector<32x64xbf16>
    %cst_34 = arith.constant dense<0.000000e+00> : vector<11x64xf32>
    %41 = tpu.matmul %38, %40, %cst_34 {dimension_numbers = #tpu.dot_dimension_numbers<[1], [0], [0], [1], [0, 0, 1, 1], [], []>} : vector<11x32xbf16>, vector<32x64xbf16>, vector<11x64xf32> -> vector<11x64xf32>
    %42 = arith.addf %34, %41 : vector<11x64xf32>
    %c1_i32_35 = arith.constant 1 : i32
    %43 = arith.addi %0, %c1_i32_35 : i32
    %c0_36 = arith.constant 0 : index
    %44 = arith.index_cast %43 : i32 to index
    %c2_37 = arith.constant 2 : index
    %c0_38 = arith.constant 0 : index
    %45 = vector.load %arg2[%c0_36, %44, %c2_37, %c0_38] : memref<1x13x13x32xbf16, #tpu.memory_space<vmem>>, vector<1x1x11x32xbf16>
    %46 = vector.shape_cast %45 : vector<1x1x11x32xbf16> to vector<11x32xbf16>
    %c5 = arith.constant 5 : index
    %c0_39 = arith.constant 0 : index
    %c0_40 = arith.constant 0 : index
    %47 = vector.load %arg3[%c5, %c0_39, %c0_40] : memref<9x32x64xbf16, #tpu.memory_space<vmem>>, vector<1x32x64xbf16>
    %48 = vector.shape_cast %47 : vector<1x32x64xbf16> to vector<32x64xbf16>
    %cst_41 = arith.constant dense<0.000000e+00> : vector<11x64xf32>
    %49 = tpu.matmul %46, %48, %cst_41 {dimension_numbers = #tpu.dot_dimension_numbers<[1], [0], [0], [1], [0, 0, 1, 1], [], []>} : vector<11x32xbf16>, vector<32x64xbf16>, vector<11x64xf32> -> vector<11x64xf32>
    %50 = arith.addf %42, %49 : vector<11x64xf32>
    %c2_i32_42 = arith.constant 2 : i32
    %51 = arith.addi %0, %c2_i32_42 : i32
    %c0_43 = arith.constant 0 : index
    %52 = arith.index_cast %51 : i32 to index
    %c0_44 = arith.constant 0 : index
    %c0_45 = arith.constant 0 : index
    %53 = vector.load %arg2[%c0_43, %52, %c0_44, %c0_45] : memref<1x13x13x32xbf16, #tpu.memory_space<vmem>>, vector<1x1x11x32xbf16>
    %54 = vector.shape_cast %53 : vector<1x1x11x32xbf16> to vector<11x32xbf16>
    %c6 = arith.constant 6 : index
    %c0_46 = arith.constant 0 : index
    %c0_47 = arith.constant 0 : index
    %55 = vector.load %arg3[%c6, %c0_46, %c0_47] : memref<9x32x64xbf16, #tpu.memory_space<vmem>>, vector<1x32x64xbf16>
    %56 = vector.shape_cast %55 : vector<1x32x64xbf16> to vector<32x64xbf16>
    %cst_48 = arith.constant dense<0.000000e+00> : vector<11x64xf32>
    %57 = tpu.matmul %54, %56, %cst_48 {dimension_numbers = #tpu.dot_dimension_numbers<[1], [0], [0], [1], [0, 0, 1, 1], [], []>} : vector<11x32xbf16>, vector<32x64xbf16>, vector<11x64xf32> -> vector<11x64xf32>
    %58 = arith.addf %50, %57 : vector<11x64xf32>
    %c2_i32_49 = arith.constant 2 : i32
    %59 = arith.addi %0, %c2_i32_49 : i32
    %c0_50 = arith.constant 0 : index
    %60 = arith.index_cast %59 : i32 to index
    %c1_51 = arith.constant 1 : index
    %c0_52 = arith.constant 0 : index
    %61 = vector.load %arg2[%c0_50, %60, %c1_51, %c0_52] : memref<1x13x13x32xbf16, #tpu.memory_space<vmem>>, vector<1x1x11x32xbf16>
    %62 = vector.shape_cast %61 : vector<1x1x11x32xbf16> to vector<11x32xbf16>
    %c7 = arith.constant 7 : index
    %c0_53 = arith.constant 0 : index
    %c0_54 = arith.constant 0 : index
    %63 = vector.load %arg3[%c7, %c0_53, %c0_54] : memref<9x32x64xbf16, #tpu.memory_space<vmem>>, vector<1x32x64xbf16>
    %64 = vector.shape_cast %63 : vector<1x32x64xbf16> to vector<32x64xbf16>
    %cst_55 = arith.constant dense<0.000000e+00> : vector<11x64xf32>
    %65 = tpu.matmul %62, %64, %cst_55 {dimension_numbers = #tpu.dot_dimension_numbers<[1], [0], [0], [1], [0, 0, 1, 1], [], []>} : vector<11x32xbf16>, vector<32x64xbf16>, vector<11x64xf32> -> vector<11x64xf32>
    %66 = arith.addf %58, %65 : vector<11x64xf32>
    %c2_i32_56 = arith.constant 2 : i32
    %67 = arith.addi %0, %c2_i32_56 : i32
    %c0_57 = arith.constant 0 : index
    %68 = arith.index_cast %67 : i32 to index
    %c2_58 = arith.constant 2 : index
    %c0_59 = arith.constant 0 : index
    %69 = vector.load %arg2[%c0_57, %68, %c2_58, %c0_59] : memref<1x13x13x32xbf16, #tpu.memory_space<vmem>>, vector<1x1x11x32xbf16>
    %70 = vector.shape_cast %69 : vector<1x1x11x32xbf16> to vector<11x32xbf16>
    %c8 = arith.constant 8 : index
    %c0_60 = arith.constant 0 : index
    %c0_61 = arith.constant 0 : index
    %71 = vector.load %arg3[%c8, %c0_60, %c0_61] : memref<9x32x64xbf16, #tpu.memory_space<vmem>>, vector<1x32x64xbf16>
    %72 = vector.shape_cast %71 : vector<1x32x64xbf16> to vector<32x64xbf16>
    %cst_62 = arith.constant dense<0.000000e+00> : vector<11x64xf32>
    %73 = tpu.matmul %70, %72, %cst_62 {dimension_numbers = #tpu.dot_dimension_numbers<[1], [0], [0], [1], [0, 0, 1, 1], [], []>} : vector<11x32xbf16>, vector<32x64xbf16>, vector<11x64xf32> -> vector<11x64xf32>
    %74 = arith.addf %66, %73 : vector<11x64xf32>
    %75 = vector.broadcast %1 : vector<1x64xf32> to vector<11x64xf32>
    %76 = arith.addf %74, %75 : vector<11x64xf32>
    %cst_63 = arith.constant 0.000000e+00 : f32
    %77 = vector.broadcast %cst_63 : f32 to vector<11x64xf32>
    %78 = arith.maximumf %76, %77 : vector<11x64xf32>
    %c1_i32_64 = arith.constant 1 : i32
    %79 = arith.addi %0, %c1_i32_64 : i32
    %cst_65 = arith.constant 0.000000e+00 : f32
    %80 = vector.broadcast %cst_65 : f32 to vector<11x64xf32>
    %c0_i32_66 = arith.constant 0 : i32
    %81 = arith.addi %79, %c0_i32_66 : i32
    %c0_67 = arith.constant 0 : index
    %82 = arith.index_cast %81 : i32 to index
    %c0_68 = arith.constant 0 : index
    %c0_69 = arith.constant 0 : index
    %83 = vector.load %arg2[%c0_67, %82, %c0_68, %c0_69] : memref<1x13x13x32xbf16, #tpu.memory_space<vmem>>, vector<1x1x11x32xbf16>
    %84 = vector.shape_cast %83 : vector<1x1x11x32xbf16> to vector<11x32xbf16>
    %c0_70 = arith.constant 0 : index
    %c0_71 = arith.constant 0 : index
    %c0_72 = arith.constant 0 : index
    %85 = vector.load %arg3[%c0_70, %c0_71, %c0_72] : memref<9x32x64xbf16, #tpu.memory_space<vmem>>, vector<1x32x64xbf16>
    %86 = vector.shape_cast %85 : vector<1x32x64xbf16> to vector<32x64xbf16>
    %cst_73 = arith.constant dense<0.000000e+00> : vector<11x64xf32>
    %87 = tpu.matmul %84, %86, %cst_73 {dimension_numbers = #tpu.dot_dimension_numbers<[1], [0], [0], [1], [0, 0, 1, 1], [], []>} : vector<11x32xbf16>, vector<32x64xbf16>, vector<11x64xf32> -> vector<11x64xf32>
    %88 = arith.addf %80, %87 : vector<11x64xf32>
    %c0_i32_74 = arith.constant 0 : i32
    %89 = arith.addi %79, %c0_i32_74 : i32
    %c0_75 = arith.constant 0 : index
    %90 = arith.index_cast %89 : i32 to index
    %c1_76 = arith.constant 1 : index
    %c0_77 = arith.constant 0 : index
    %91 = vector.load %arg2[%c0_75, %90, %c1_76, %c0_77] : memref<1x13x13x32xbf16, #tpu.memory_space<vmem>>, vector<1x1x11x32xbf16>
    %92 = vector.shape_cast %91 : vector<1x1x11x32xbf16> to vector<11x32xbf16>
    %c1_78 = arith.constant 1 : index
    %c0_79 = arith.constant 0 : index
    %c0_80 = arith.constant 0 : index
    %93 = vector.load %arg3[%c1_78, %c0_79, %c0_80] : memref<9x32x64xbf16, #tpu.memory_space<vmem>>, vector<1x32x64xbf16>
    %94 = vector.shape_cast %93 : vector<1x32x64xbf16> to vector<32x64xbf16>
    %cst_81 = arith.constant dense<0.000000e+00> : vector<11x64xf32>
    %95 = tpu.matmul %92, %94, %cst_81 {dimension_numbers = #tpu.dot_dimension_numbers<[1], [0], [0], [1], [0, 0, 1, 1], [], []>} : vector<11x32xbf16>, vector<32x64xbf16>, vector<11x64xf32> -> vector<11x64xf32>
    %96 = arith.addf %88, %95 : vector<11x64xf32>
    %c0_i32_82 = arith.constant 0 : i32
    %97 = arith.addi %79, %c0_i32_82 : i32
    %c0_83 = arith.constant 0 : index
    %98 = arith.index_cast %97 : i32 to index
    %c2_84 = arith.constant 2 : index
    %c0_85 = arith.constant 0 : index
    %99 = vector.load %arg2[%c0_83, %98, %c2_84, %c0_85] : memref<1x13x13x32xbf16, #tpu.memory_space<vmem>>, vector<1x1x11x32xbf16>
    %100 = vector.shape_cast %99 : vector<1x1x11x32xbf16> to vector<11x32xbf16>
    %c2_86 = arith.constant 2 : index
    %c0_87 = arith.constant 0 : index
    %c0_88 = arith.constant 0 : index
    %101 = vector.load %arg3[%c2_86, %c0_87, %c0_88] : memref<9x32x64xbf16, #tpu.memory_space<vmem>>, vector<1x32x64xbf16>
    %102 = vector.shape_cast %101 : vector<1x32x64xbf16> to vector<32x64xbf16>
    %cst_89 = arith.constant dense<0.000000e+00> : vector<11x64xf32>
    %103 = tpu.matmul %100, %102, %cst_89 {dimension_numbers = #tpu.dot_dimension_numbers<[1], [0], [0], [1], [0, 0, 1, 1], [], []>} : vector<11x32xbf16>, vector<32x64xbf16>, vector<11x64xf32> -> vector<11x64xf32>
    %104 = arith.addf %96, %103 : vector<11x64xf32>
    %c1_i32_90 = arith.constant 1 : i32
    %105 = arith.addi %79, %c1_i32_90 : i32
    %c0_91 = arith.constant 0 : index
    %106 = arith.index_cast %105 : i32 to index
    %c0_92 = arith.constant 0 : index
    %c0_93 = arith.constant 0 : index
    %107 = vector.load %arg2[%c0_91, %106, %c0_92, %c0_93] : memref<1x13x13x32xbf16, #tpu.memory_space<vmem>>, vector<1x1x11x32xbf16>
    %108 = vector.shape_cast %107 : vector<1x1x11x32xbf16> to vector<11x32xbf16>
    %c3_94 = arith.constant 3 : index
    %c0_95 = arith.constant 0 : index
    %c0_96 = arith.constant 0 : index
    %109 = vector.load %arg3[%c3_94, %c0_95, %c0_96] : memref<9x32x64xbf16, #tpu.memory_space<vmem>>, vector<1x32x64xbf16>
    %110 = vector.shape_cast %109 : vector<1x32x64xbf16> to vector<32x64xbf16>
    %cst_97 = arith.constant dense<0.000000e+00> : vector<11x64xf32>
    %111 = tpu.matmul %108, %110, %cst_97 {dimension_numbers = #tpu.dot_dimension_numbers<[1], [0], [0], [1], [0, 0, 1, 1], [], []>} : vector<11x32xbf16>, vector<32x64xbf16>, vector<11x64xf32> -> vector<11x64xf32>
    %112 = arith.addf %104, %111 : vector<11x64xf32>
    %c1_i32_98 = arith.constant 1 : i32
    %113 = arith.addi %79, %c1_i32_98 : i32
    %c0_99 = arith.constant 0 : index
    %114 = arith.index_cast %113 : i32 to index
    %c1_100 = arith.constant 1 : index
    %c0_101 = arith.constant 0 : index
    %115 = vector.load %arg2[%c0_99, %114, %c1_100, %c0_101] : memref<1x13x13x32xbf16, #tpu.memory_space<vmem>>, vector<1x1x11x32xbf16>
    %116 = vector.shape_cast %115 : vector<1x1x11x32xbf16> to vector<11x32xbf16>
    %c4_102 = arith.constant 4 : index
    %c0_103 = arith.constant 0 : index
    %c0_104 = arith.constant 0 : index
    %117 = vector.load %arg3[%c4_102, %c0_103, %c0_104] : memref<9x32x64xbf16, #tpu.memory_space<vmem>>, vector<1x32x64xbf16>
    %118 = vector.shape_cast %117 : vector<1x32x64xbf16> to vector<32x64xbf16>
    %cst_105 = arith.constant dense<0.000000e+00> : vector<11x64xf32>
    %119 = tpu.matmul %116, %118, %cst_105 {dimension_numbers = #tpu.dot_dimension_numbers<[1], [0], [0], [1], [0, 0, 1, 1], [], []>} : vector<11x32xbf16>, vector<32x64xbf16>, vector<11x64xf32> -> vector<11x64xf32>
    %120 = arith.addf %112, %119 : vector<11x64xf32>
    %c1_i32_106 = arith.constant 1 : i32
    %121 = arith.addi %79, %c1_i32_106 : i32
    %c0_107 = arith.constant 0 : index
    %122 = arith.index_cast %121 : i32 to index
    %c2_108 = arith.constant 2 : index
    %c0_109 = arith.constant 0 : index
    %123 = vector.load %arg2[%c0_107, %122, %c2_108, %c0_109] : memref<1x13x13x32xbf16, #tpu.memory_space<vmem>>, vector<1x1x11x32xbf16>
    %124 = vector.shape_cast %123 : vector<1x1x11x32xbf16> to vector<11x32xbf16>
    %c5_110 = arith.constant 5 : index
    %c0_111 = arith.constant 0 : index
    %c0_112 = arith.constant 0 : index
    %125 = vector.load %arg3[%c5_110, %c0_111, %c0_112] : memref<9x32x64xbf16, #tpu.memory_space<vmem>>, vector<1x32x64xbf16>
    %126 = vector.shape_cast %125 : vector<1x32x64xbf16> to vector<32x64xbf16>
    %cst_113 = arith.constant dense<0.000000e+00> : vector<11x64xf32>
    %127 = tpu.matmul %124, %126, %cst_113 {dimension_numbers = #tpu.dot_dimension_numbers<[1], [0], [0], [1], [0, 0, 1, 1], [], []>} : vector<11x32xbf16>, vector<32x64xbf16>, vector<11x64xf32> -> vector<11x64xf32>
    %128 = arith.addf %120, %127 : vector<11x64xf32>
    %c2_i32_114 = arith.constant 2 : i32
    %129 = arith.addi %79, %c2_i32_114 : i32
    %c0_115 = arith.constant 0 : index
    %130 = arith.index_cast %129 : i32 to index
    %c0_116 = arith.constant 0 : index
    %c0_117 = arith.constant 0 : index
    %131 = vector.load %arg2[%c0_115, %130, %c0_116, %c0_117] : memref<1x13x13x32xbf16, #tpu.memory_space<vmem>>, vector<1x1x11x32xbf16>
    %132 = vector.shape_cast %131 : vector<1x1x11x32xbf16> to vector<11x32xbf16>
    %c6_118 = arith.constant 6 : index
    %c0_119 = arith.constant 0 : index
    %c0_120 = arith.constant 0 : index
    %133 = vector.load %arg3[%c6_118, %c0_119, %c0_120] : memref<9x32x64xbf16, #tpu.memory_space<vmem>>, vector<1x32x64xbf16>
    %134 = vector.shape_cast %133 : vector<1x32x64xbf16> to vector<32x64xbf16>
    %cst_121 = arith.constant dense<0.000000e+00> : vector<11x64xf32>
    %135 = tpu.matmul %132, %134, %cst_121 {dimension_numbers = #tpu.dot_dimension_numbers<[1], [0], [0], [1], [0, 0, 1, 1], [], []>} : vector<11x32xbf16>, vector<32x64xbf16>, vector<11x64xf32> -> vector<11x64xf32>
    %136 = arith.addf %128, %135 : vector<11x64xf32>
    %c2_i32_122 = arith.constant 2 : i32
    %137 = arith.addi %79, %c2_i32_122 : i32
    %c0_123 = arith.constant 0 : index
    %138 = arith.index_cast %137 : i32 to index
    %c1_124 = arith.constant 1 : index
    %c0_125 = arith.constant 0 : index
    %139 = vector.load %arg2[%c0_123, %138, %c1_124, %c0_125] : memref<1x13x13x32xbf16, #tpu.memory_space<vmem>>, vector<1x1x11x32xbf16>
    %140 = vector.shape_cast %139 : vector<1x1x11x32xbf16> to vector<11x32xbf16>
    %c7_126 = arith.constant 7 : index
    %c0_127 = arith.constant 0 : index
    %c0_128 = arith.constant 0 : index
    %141 = vector.load %arg3[%c7_126, %c0_127, %c0_128] : memref<9x32x64xbf16, #tpu.memory_space<vmem>>, vector<1x32x64xbf16>
    %142 = vector.shape_cast %141 : vector<1x32x64xbf16> to vector<32x64xbf16>
    %cst_129 = arith.constant dense<0.000000e+00> : vector<11x64xf32>
    %143 = tpu.matmul %140, %142, %cst_129 {dimension_numbers = #tpu.dot_dimension_numbers<[1], [0], [0], [1], [0, 0, 1, 1], [], []>} : vector<11x32xbf16>, vector<32x64xbf16>, vector<11x64xf32> -> vector<11x64xf32>
    %144 = arith.addf %136, %143 : vector<11x64xf32>
    %c2_i32_130 = arith.constant 2 : i32
    %145 = arith.addi %79, %c2_i32_130 : i32
    %c0_131 = arith.constant 0 : index
    %146 = arith.index_cast %145 : i32 to index
    %c2_132 = arith.constant 2 : index
    %c0_133 = arith.constant 0 : index
    %147 = vector.load %arg2[%c0_131, %146, %c2_132, %c0_133] : memref<1x13x13x32xbf16, #tpu.memory_space<vmem>>, vector<1x1x11x32xbf16>
    %148 = vector.shape_cast %147 : vector<1x1x11x32xbf16> to vector<11x32xbf16>
    %c8_134 = arith.constant 8 : index
    %c0_135 = arith.constant 0 : index
    %c0_136 = arith.constant 0 : index
    %149 = vector.load %arg3[%c8_134, %c0_135, %c0_136] : memref<9x32x64xbf16, #tpu.memory_space<vmem>>, vector<1x32x64xbf16>
    %150 = vector.shape_cast %149 : vector<1x32x64xbf16> to vector<32x64xbf16>
    %cst_137 = arith.constant dense<0.000000e+00> : vector<11x64xf32>
    %151 = tpu.matmul %148, %150, %cst_137 {dimension_numbers = #tpu.dot_dimension_numbers<[1], [0], [0], [1], [0, 0, 1, 1], [], []>} : vector<11x32xbf16>, vector<32x64xbf16>, vector<11x64xf32> -> vector<11x64xf32>
    %152 = arith.addf %144, %151 : vector<11x64xf32>
    %153 = vector.broadcast %1 : vector<1x64xf32> to vector<11x64xf32>
    %154 = arith.addf %152, %153 : vector<11x64xf32>
    %cst_138 = arith.constant 0.000000e+00 : f32
    %155 = vector.broadcast %cst_138 : f32 to vector<11x64xf32>
    %156 = arith.maximumf %154, %155 : vector<11x64xf32>
    %157 = arith.maximumf %78, %156 : vector<11x64xf32>
    %c0_139 = arith.constant 0 : index
    %c0_140 = arith.constant 0 : index
    %158 = vector.load %arg6[%c0_139, %c0_140] : memref<11x64xf32, #tpu.memory_space<vmem>>, vector<11x64xf32>
    tpu.vector_store %arg6[%c0_139, %c0_140], %157 {strides = array<i32>} : memref<11x64xf32, #tpu.memory_space<vmem>>, vector<11x64xf32>,
    %c0_141 = arith.constant 0 : index
    %c0_142 = arith.constant 0 : index
    %159 = tpu.strided_load %arg6[%c0_141, %c0_142] {strides = array<i32: 2, 1>} : memref<11x64xf32, #tpu.memory_space<vmem>>, vector<5x64xf32>
    %c1_143 = arith.constant 1 : index
    %c0_144 = arith.constant 0 : index
    %160 = tpu.strided_load %arg6[%c1_143, %c0_144] {strides = array<i32: 2, 1>} : memref<11x64xf32, #tpu.memory_space<vmem>>, vector<5x64xf32>
    %161 = arith.maximumf %159, %160 : vector<5x64xf32>
    %162 = arith.truncf %161 : vector<5x64xf32> to vector<5x64xbf16>
    %c0_145 = arith.constant 0 : index
    %c0_146 = arith.constant 0 : index
    %c0_147 = arith.constant 0 : index
    %c0_148 = arith.constant 0 : index
    %163 = vector.load %arg5[%c0_145, %c0_146, %c0_147, %c0_148] : memref<1x1x5x64xbf16, #tpu.memory_space<vmem>>, vector<1x1x5x64xbf16>
    %164 = vector.shape_cast %163 : vector<1x1x5x64xbf16> to vector<5x64xbf16>
    %165 = vector.shape_cast %162 : vector<5x64xbf16> to vector<1x1x5x64xbf16>
    tpu.vector_store %arg5[%c0_145, %c0_146, %c0_147, %c0_148], %165 {strides = array<i32>} : memref<1x1x5x64xbf16, #tpu.memory_space<vmem>>, vector<1x1x5x64xbf16>,
    return
  }
  func.func @transform_0(%arg0: i32, %arg1: i32) -> (i32, i32, i32, i32) {
    %c0_i32 = arith.constant 0 : i32
    %c0_i32_0 = arith.constant 0 : i32
    %c0_i32_1 = arith.constant 0 : i32
    %c0_i32_2 = arith.constant 0 : i32
    return %arg0, %c0_i32, %c0_i32_0, %c0_i32_1 : i32, i32, i32, i32
  }
  func.func @transform_1(%arg0: i32, %arg1: i32) -> (i32, i32, i32) {
    %c0_i32 = arith.constant 0 : i32
    %c0_i32_0 = arith.constant 0 : i32
    %c0_i32_1 = arith.constant 0 : i32
    %c0_i32_2 = arith.constant 0 : i32
    return %c0_i32, %c0_i32_0, %c0_i32_1 : i32, i32, i32
  }
  func.func @transform_2(%arg0: i32, %arg1: i32) -> (i32, i32) {
    %c0_i32 = arith.constant 0 : i32
    %c0_i32_0 = arith.constant 0 : i32
    %c0_i32_1 = arith.constant 0 : i32
    return %c0_i32, %c0_i32_0 : i32, i32
  }
  func.func @transform_3(%arg0: i32, %arg1: i32) -> (i32, i32, i32, i32) {
    %c0_i32 = arith.constant 0 : i32
    %c0_i32_0 = arith.constant 0 : i32
    %c0_i32_1 = arith.constant 0 : i32
    return %arg0, %arg1, %c0_i32, %c0_i32_0 : i32, i32, i32, i32
  }
}

module attributes {stable_mosaic.version = 11 : i64} {
  func.func @_fc_fused_kernel(%arg0: i32, %arg1: memref<16x1600xbf16, #tpu.memory_space<vmem>>, %arg2: memref<1600x128xbf16, #tpu.memory_space<vmem>>, %arg3: memref<1x128xf32, #tpu.memory_space<vmem>>, %arg4: memref<128x128xbf16, #tpu.memory_space<vmem>>, %arg5: memref<1x128xf32, #tpu.memory_space<vmem>>, %arg6: memref<16x128xf32, #tpu.memory_space<vmem>>) attributes {dimension_semantics = [#tpu.dimension_semantics<parallel>], iteration_bounds = array<i64: 1>, scalar_prefetch = 0 : i64, scratch_operands = 0 : i64, tpu.core_type = #tpu.core_type<tc>, window_params = [{transform_indices = @transform_0, window_bounds = array<i64: 16, 1600>}, {pipeline_mode = #tpu.pipeline_mode<synchronous>, transform_indices = @transform_1, window_bounds = array<i64: 1600, 128>}, {pipeline_mode = #tpu.pipeline_mode<synchronous>, transform_indices = @transform_2, window_bounds = array<i64: 1, 128>}, {pipeline_mode = #tpu.pipeline_mode<synchronous>, transform_indices = @transform_3, window_bounds = array<i64: 128, 128>}, {pipeline_mode = #tpu.pipeline_mode<synchronous>, transform_indices = @transform_4, window_bounds = array<i64: 1, 128>}, {transform_indices = @transform_5, window_bounds = array<i64: 16, 128>}]} {
    %c0 = arith.constant 0 : index
    %c0_0 = arith.constant 0 : index
    %0 = vector.load %arg1[%c0, %c0_0] : memref<16x1600xbf16, #tpu.memory_space<vmem>>, vector<16x1600xbf16>
    %c0_1 = arith.constant 0 : index
    %c0_2 = arith.constant 0 : index
    %1 = vector.load %arg2[%c0_1, %c0_2] : memref<1600x128xbf16, #tpu.memory_space<vmem>>, vector<1600x128xbf16>
    %cst = arith.constant dense<0.000000e+00> : vector<16x128xf32>
    %2 = tpu.matmul %0, %1, %cst {dimension_numbers = #tpu.dot_dimension_numbers<[1], [0], [0], [1], [0, 0, 1, 1], [], []>} : vector<16x1600xbf16>, vector<1600x128xbf16>, vector<16x128xf32> -> vector<16x128xf32>
    %c0_3 = arith.constant 0 : index
    %c0_4 = arith.constant 0 : index
    %3 = vector.load %arg3[%c0_3, %c0_4] : memref<1x128xf32, #tpu.memory_space<vmem>>, vector<1x128xf32>
    %4 = vector.broadcast %3 : vector<1x128xf32> to vector<16x128xf32>
    %5 = arith.addf %2, %4 : vector<16x128xf32>
    %cst_5 = arith.constant 0.000000e+00 : f32
    %6 = vector.broadcast %cst_5 : f32 to vector<16x128xf32>
    %7 = arith.maximumf %5, %6 : vector<16x128xf32>
    %8 = arith.truncf %7 : vector<16x128xf32> to vector<16x128xbf16>
    %c0_6 = arith.constant 0 : index
    %c0_7 = arith.constant 0 : index
    %9 = vector.load %arg4[%c0_6, %c0_7] : memref<128x128xbf16, #tpu.memory_space<vmem>>, vector<128x128xbf16>
    %cst_8 = arith.constant dense<0.000000e+00> : vector<16x128xf32>
    %10 = tpu.matmul %8, %9, %cst_8 {dimension_numbers = #tpu.dot_dimension_numbers<[1], [0], [0], [1], [0, 0, 1, 1], [], []>} : vector<16x128xbf16>, vector<128x128xbf16>, vector<16x128xf32> -> vector<16x128xf32>
    %c0_9 = arith.constant 0 : index
    %c0_10 = arith.constant 0 : index
    %11 = vector.load %arg5[%c0_9, %c0_10] : memref<1x128xf32, #tpu.memory_space<vmem>>, vector<1x128xf32>
    %12 = vector.broadcast %11 : vector<1x128xf32> to vector<16x128xf32>
    %13 = arith.addf %10, %12 : vector<16x128xf32>
    %c0_11 = arith.constant 0 : index
    %c0_12 = arith.constant 0 : index
    %14 = vector.load %arg6[%c0_11, %c0_12] : memref<16x128xf32, #tpu.memory_space<vmem>>, vector<16x128xf32>
    tpu.vector_store %arg6[%c0_11, %c0_12], %13 {strides = array<i32>} : memref<16x128xf32, #tpu.memory_space<vmem>>, vector<16x128xf32>,
    return
  }
  func.func @transform_0(%arg0: i32) -> (i32, i32) {
    %c0_i32 = arith.constant 0 : i32
    %c0_i32_0 = arith.constant 0 : i32
    return %arg0, %c0_i32 : i32, i32
  }
  func.func @transform_1(%arg0: i32) -> (i32, i32) {
    %c0_i32 = arith.constant 0 : i32
    %c0_i32_0 = arith.constant 0 : i32
    %c0_i32_1 = arith.constant 0 : i32
    return %c0_i32, %c0_i32_0 : i32, i32
  }
  func.func @transform_2(%arg0: i32) -> (i32, i32) {
    %c0_i32 = arith.constant 0 : i32
    %c0_i32_0 = arith.constant 0 : i32
    %c0_i32_1 = arith.constant 0 : i32
    return %c0_i32, %c0_i32_0 : i32, i32
  }
  func.func @transform_3(%arg0: i32) -> (i32, i32) {
    %c0_i32 = arith.constant 0 : i32
    %c0_i32_0 = arith.constant 0 : i32
    %c0_i32_1 = arith.constant 0 : i32
    return %c0_i32, %c0_i32_0 : i32, i32
  }
  func.func @transform_4(%arg0: i32) -> (i32, i32) {
    %c0_i32 = arith.constant 0 : i32
    %c0_i32_0 = arith.constant 0 : i32
    %c0_i32_1 = arith.constant 0 : i32
    return %c0_i32, %c0_i32_0 : i32, i32
  }
  func.func @transform_5(%arg0: i32) -> (i32, i32) {
    %c0_i32 = arith.constant 0 : i32
    %c0_i32_0 = arith.constant 0 : i32
    return %arg0, %c0_i32 : i32, i32
  }
}

</mosaic_0001>

<bundles_post_ra>
// kernel: number_cnn_forward.3
= control target key start
LH: loop header
LB: loop body
LE: loop exit
PB: predicated region body
PF: predicated region fallthrough
CT: control target
= control target key end

     0   :  { %s1013_s12 = smov 0   ;;  %s1015_s13 = smov 0   ;;  %s1308_s0 = inlined_call_operand.vmem [shape: f32[2,28,28,1], index: 0, kind: input, shape index: {}]   ;;  %s1309_s1 = inlined_call_operand.vmem [shape: f32[9,1,32], index: 1, kind: input, shape index: {}]   ;;  %s1310_s2 = inlined_call_operand.vmem [shape: f32[1,32], index: 2, kind: input, shape index: {}]   ;;  %s1311_s3 = inlined_call_operand.vmem [shape: bf16[2,13,13,32], index: 3, kind: output, shape index: {}]  }
   0x1   :  { %s1017_s14 = smov 0   ;;  %s1019_s15 = smov 0  }
   0x2   :  { %s1021_s16 = smov 0  }
   0x3 LB: > { %s22_s17 = sadd.s32 1, %s982_s14  ;;  %s25_s18 = sadd.s32 1, %s986_s15  ;;  %s990_s16 = sphi %s1021_s16, %s13_s16   ;;  %s986_s15 = sphi %s1019_s15, %s1315_s15   ;;  %s982_s14 = sphi %s1017_s14, %s1314_s14   ;;  %s978_s13 = sphi %s1015_s13, %s1313_s13   ;;  %s974_s12 = sphi %s1013_s12, %s1312_s12  }
   0x4   : > { %p23_p0 = scmp.ge.s32.totalorder %s22_s17, 13  ;;  %p834_p1 = scmp.ge.s32.totalorder %s990_s16, 1 }
   0x5   : > { %p151_p2 = scmp.lt.s32.totalorder %s990_s16, 27 }
   0x6   : > { %s1317_s17 = smov (%p23_p0, %s22_s17), 0  ;;  %s1319_s18 = smov (!%p23_p0, %s25_s18), %s986_s15 }
   0x7   : > { %p152_p3 = pnand %p834_p1, %p151_p2  ;;  %p27_p4 = scmp.ge.s32.totalorder %s1319_s18, 2 }
   0x8   : > { %p179_p5 = scmp.lt.s32.totalorder (!%p152_p3), %s978_s13, 1  ;;  %s892_s20 = sshll.u32 (!%p152_p3), %s974_s12, 6 }
   0x9   : > { %s1321_s18 = smov (%p27_p4, %s1319_s18), 0  ;;  %155 = sbr.rel (%p152_p3) target bundleno = 280 (0x118), region = 32 }
   0xa   : > { %p186_p6 = scmp.lt.s32.totalorder (!%p152_p3), %s974_s12, 12 }
   0xe   : > { %v992_v0 = vmov 0   ;;  %s1323_s13 = smov (!%p179_p5, %s978_s13), 1  ;;  %v1101_v48 = vld [vmem:[%s1309_s1 + $0x1] ss:$0 sm:$0xff]  ;;  %v1107_v50 = vld [vmem:[%s1309_s1 + $0x2] ss:$0 sm:$0xff] }
   0xf   : > { %941 = vset.pattern.permute.xlu2 %v992_v0  ;;  %940 = vset.pattern.permute.xlu1 %v992_v0  ;;  %s896_s19 = smul.u32 896, %s1323_s13  ;;  %v1112_v51 = vld [vmem:[%s1309_s1] ss:$0 sm:$0xff]  ;;  %vm705_vm0 = vcmask 261120   ;;  %s1325_s12 = smov (!%p186_p6, %s974_s12), 12  ;;  %vm709_vm1 = vcmask 254976  }
  0x10   : > { %939 = vset.pattern.permute.xlu0 %v992_v0  ;;  %s897_s25 = smul.u32 26, %s1323_s13  ;;  %s836_s26 = sshll.u32 %s1325_s12, 1  ;;  %vm724_vm2 = vcmask 256000   ;;  %vm725_vm3 = vsmask.f32 2304  ;;  %vm722_vm4 = vcmask 257024  }
  0x11   : > { %s183_s23 = scalar_lea.vmem %s1308_s0, %s896_s19  ;;  %vm726_vm5 = vmand %vm724_vm2, %vm725_vm3 }
  0x12   : > { %s1052_s24 = scalar_lea.vmem %s183_s23, %s892_s20  ;;  %s190_s27 = sadd.s32 %s897_s25, %s836_s26 }
  0x13   : > { %v233_v1 = vld [vmem:[%s1052_s24 + $0x1] sm:$0xff]  ;;  %v199_v2 = vld [vmem:[%s1052_s24 + $0x10] sm:$0xff]  ;;  %v200_v5 = vld [vmem:[%s1052_s24 + $0x18] sm:$0x3]  ;;  %s837_s28 = sshll.u32 %s190_s27, 2 }
  0x14   : > { %v197_v3 = vld [vmem:[%s1052_s24] sm:$0xff]  ;;  %241 = vperm.xlu2 %941, %v233_v1   ;;  %214 = vperm.xlu1 %940, %v199_v2   ;;  %v234_v4 = vld [vmem:[%s1052_s24 + $0x9] sm:$0xff]  ;;  %v236_v8 = vld [vmem:[%s1052_s24 + $0x19] sm:$0x3]  ;;  %s192_s4 = scalar_lea.vmem %s1311_s3, %s837_s28 }
  0x15   : > { %204 = vperm.xlu0 %939, %v197_v3   ;;  %v198_v6 = vld [vmem:[%s1052_s24 + $0x8] sm:$0xff]  ;;  %v235_v9 = vld [vmem:[%s1052_s24 + $0x11] sm:$0xff]  ;;  %v273_v10 = vld [vmem:[%s1052_s24 + $0x1a] sm:$0x3] }
  0x16   : > { %v270_v7 = vld [vmem:[%s1052_s24 + $0x2] sm:$0xff]  ;;  %v272_v11 = vld [vmem:[%s1052_s24 + $0x12] sm:$0xff]  ;;  %v271_v12 = vld [vmem:[%s1052_s24 + $0xa] sm:$0xff] }
  0x17   : > { %v846_v13 = vld [vmem:[%s1052_s24 + $0x30] sm:$0xff]  ;;  %v845_v14 = vld [vmem:[%s1052_s24 + $0x28] sm:$0xff]  ;;  %v844_v15 = vld [vmem:[%s1052_s24 + $0x20] sm:$0xff] }
  0x18   : > { %v850_v16 = vld [vmem:[%s1052_s24 + $0x29] sm:$0xff]  ;;  %v849_v17 = vld [vmem:[%s1052_s24 + $0x21] sm:$0xff]  ;;  %v847_v18 = vld [vmem:[%s1052_s24 + $0x38] sm:$0x3] }
  0x19   : > { %v854_v19 = vld [vmem:[%s1052_s24 + $0x22] sm:$0xff]  ;;  %v852_v20 = vld [vmem:[%s1052_s24 + $0x39] sm:$0x3]  ;;  %v851_v21 = vld [vmem:[%s1052_s24 + $0x31] sm:$0xff] }
  0x1a   : > { %v857_v22 = vld [vmem:[%s1052_s24 + $0x3a] sm:$0x3]  ;;  %v856_v23 = vld [vmem:[%s1052_s24 + $0x32] sm:$0xff]  ;;  %v855_v24 = vld [vmem:[%s1052_s24 + $0x2a] sm:$0xff] }
  0x1b   : > { %v863_v25 = vld [vmem:[%s1052_s24 + $0x50] sm:$0xff]  ;;  %v862_v26 = vld [vmem:[%s1052_s24 + $0x48] sm:$0xff]  ;;  %v861_v27 = vld [vmem:[%s1052_s24 + $0x40] sm:$0xff] }
  0x1c   : > { %246 = vperm.xlu2 %941, %v234_v4   ;;  %219 = vperm.xlu1 %940, %v200_v5   ;;  %v867_v28 = vld [vmem:[%s1052_s24 + $0x49] sm:$0xff]  ;;  %v866_v29 = vld [vmem:[%s1052_s24 + $0x41] sm:$0xff]  ;;  %v864_v30 = vld [vmem:[%s1052_s24 + $0x58] sm:$0x3] }
  0x1d   : > { %209 = vperm.xlu0 %939, %v198_v6   ;;  %v871_v31 = vld [vmem:[%s1052_s24 + $0x42] sm:$0xff]  ;;  %v869_v32 = vld [vmem:[%s1052_s24 + $0x59] sm:$0x3]  ;;  %v868_v33 = vld [vmem:[%s1052_s24 + $0x51] sm:$0xff] }
  0x1e   : > { %v874_v34 = vld [vmem:[%s1052_s24 + $0x5a] sm:$0x3]  ;;  %v873_v35 = vld [vmem:[%s1052_s24 + $0x52] sm:$0xff]  ;;  %v872_v36 = vld [vmem:[%s1052_s24 + $0x4a] sm:$0xff] }
  0x1f   : > { %v881_v38 = vld [vmem:[%s1052_s24 + $0x78] sm:$0x3]  ;;  %v880_v39 = vld [vmem:[%s1052_s24 + $0x70] sm:$0xff]  ;;  %v878_v40 = vld [vmem:[%s1052_s24 + $0x60] sm:$0xff] }
  0x20   : > { %v885_v42 = vld [vmem:[%s1052_s24 + $0x79] sm:$0x3]  ;;  %v884_v43 = vld [vmem:[%s1052_s24 + $0x71] sm:$0xff]  ;;  %v879_v44 = vld [vmem:[%s1052_s24 + $0x68] sm:$0xff] }
  0x21   : > { %v888_v46 = vld [vmem:[%s1052_s24 + $0x72] sm:$0xff]  ;;  %v883_v47 = vld [vmem:[%s1052_s24 + $0x69] sm:$0xff]  ;;  %v882_v49 = vld [vmem:[%s1052_s24 + $0x61] sm:$0xff] }
  0x22   : > { %v887_v58 = vld [vmem:[%s1052_s24 + $0x6a] sm:$0xff]  ;;  %v886_v59 = vld [vmem:[%s1052_s24 + $0x62] sm:$0xff]  ;;  %v889_v61 = vld [vmem:[%s1052_s24 + $0x7a] sm:$0x3] }
  0x24   : > { %278 = vperm.xlu2 %941, %v270_v7   ;;  %256 = vperm.xlu1 %940, %v236_v8  }
  0x25   : > { %251 = vperm.xlu0 %939, %v235_v9  }
  0x2c   : > { %293 = vperm.xlu2 %941, %v273_v10   ;;  %288 = vperm.xlu1 %940, %v272_v11  }
  0x2d   : > { %283 = vperm.xlu0 %939, %v271_v12  }
  0x34   : > { %328 = vperm.xlu2 %941, %v846_v13   ;;  %323 = vperm.xlu1 %940, %v845_v14  }
  0x35   : > { %318 = vperm.xlu0 %939, %v844_v15  }
  0x3c   : > { %360 = vperm.xlu2 %941, %v850_v16   ;;  %355 = vperm.xlu1 %940, %v849_v17   ;;  %v1132_v16 = vld [vmem:[%s1309_s1 + $0x3] ss:$0 sm:$0xff] }
  0x3d   : > { %333 = vperm.xlu0 %939, %v847_v18  }
  0x44   : > { %392 = vperm.xlu2 %941, %v854_v19   ;;  %370 = vperm.xlu1 %940, %v852_v20  }
  0x45   : > { %365 = vperm.xlu0 %939, %v851_v21  }
  0x4c   : > { %407 = vperm.xlu2 %941, %v857_v22   ;;  %402 = vperm.xlu1 %940, %v856_v23  }
  0x4d   : > { %397 = vperm.xlu0 %939, %v855_v24  }
  0x54   : > { %442 = vperm.xlu2 %941, %v863_v25   ;;  %437 = vperm.xlu1 %940, %v862_v26   ;;  %v1141_v26 = vld [vmem:[%s1309_s1 + $0x4] ss:$0 sm:$0xff] }
  0x55   : > { %432 = vperm.xlu0 %939, %v861_v27  }
  0x5c   : > { %474 = vperm.xlu2 %941, %v867_v28   ;;  %469 = vperm.xlu1 %940, %v866_v29  }
  0x5d   : > { %447 = vperm.xlu0 %939, %v864_v30  }
  0x64   : > { %506 = vperm.xlu2 %941, %v871_v31   ;;  %484 = vperm.xlu1 %940, %v869_v32  }
  0x65   : > { %479 = vperm.xlu0 %939, %v868_v33  }
  0x6c   : > { %521 = vperm.xlu2 %941, %v874_v34   ;;  %516 = vperm.xlu1 %940, %v873_v35  }
  0x6d   : > { %511 = vperm.xlu0 %939, %v872_v36  }
  0x6e   : > { %v242_v37 = vpop.permute.xlu2 %241 }
  0x6f   : > { %v262_v52 = vmul.f32 %v1101_v48, %v242_v37 }
  0x74   : > { %618 = vperm.xlu2 %941, %v881_v38   ;;  %613 = vperm.xlu1 %940, %v880_v39   ;;  %v1157_v39 = vld [vmem:[%s1309_s1 + $0x5] ss:$0 sm:$0xff] }
  0x75   : > { %603 = vperm.xlu0 %939, %v878_v40  }
  0x76   : > { %v247_v41 = vpop.permute.xlu2 %246 }
  0x77   : > { %v263_v2 = vmul.f32 %v1101_v48, %v247_v41 }
  0x7c   : > { %650 = vperm.xlu2 %941, %v885_v42   ;;  %645 = vperm.xlu1 %940, %v884_v43  }
  0x7d   : > { %608 = vperm.xlu0 %939, %v879_v44  }
  0x7e   : > { %v279_v45 = vpop.permute.xlu2 %278 }
  0x7f   : > { %v299_v56 = vmul.f32 %v1107_v50, %v279_v45 }
  0x84   : > { %677 = vperm.xlu2 %941, %v888_v46   ;;  %640 = vperm.xlu1 %940, %v883_v47  }
  0x85   : > { %635 = vperm.xlu0 %939, %v882_v49  }
  0x86   : > { %v294_v53 = vpop.permute.xlu2 %293  ;;  %v215_v54 = vpop.permute.xlu1 %214 }
  0x87   : > { %v205_v55 = vpop.permute.xlu0 %204  ;;  %v227_v10 = vmul.f32 %v1112_v51, %v215_v54  ;;  %v302_v12 = vmul.f32 %v1107_v50, %v294_v53 }
  0x88   : > { %v225_v57 = vmul.f32 %v1112_v51, %v205_v55 }
  0x8a   : > { %v266_v60 = vadd.f32 %v262_v52, %v225_v57 }
  0x8c   : > { %v303_v62 = vadd.f32 %v299_v56, %v266_v60  ;;  %672 = vperm.xlu2 %941, %v887_v58   ;;  %667 = vperm.xlu1 %940, %v886_v59  }
  0x8d   : > { %682 = vperm.xlu0 %939, %v889_v61  }
  0x8e   : > { %v1120_v63 = vpop.permute.xlu2 %328  ;;  %v220_v0 = vpop.permute.xlu1 %219 }
  0x8f   : > { %v210_v1 = vpop.permute.xlu0 %209  ;;  %v228_v7 = vmul.f32 %v1112_v51, %v220_v0  ;;  %v341_v22 = vmul.f32 %v1132_v16, %v1120_v63 }
  0x90   : > { %v226_v3 = vmul.f32 %v1112_v51, %v210_v1 }
  0x92   : > { %v267_v4 = vadd.f32 %v263_v2, %v226_v3 }
  0x96   : > { %v361_v5 = vpop.permute.xlu2 %360  ;;  %v257_v6 = vpop.permute.xlu1 %256 }
  0x97   : > { %v265_v8 = vmul.f32 %v1101_v48, %v257_v6  ;;  %v252_v9 = vpop.permute.xlu0 %251  ;;  %v555_v29 = vmul.f32 %v1101_v48, %v361_v5  ;;  %v377_v34 = vmul.f32 %v1141_v26, %v361_v5 }
  0x98   : > { %v264_v11 = vmul.f32 %v1101_v48, %v252_v9 }
  0x99   : > { %v269_v13 = vadd.f32 %v265_v8, %v228_v7 }
  0x9a   : > { %v268_v14 = vadd.f32 %v264_v11, %v227_v10 }
  0x9b   : > { %v306_v15 = vadd.f32 %v302_v12, %v269_v13 }
  0x9e   : > { %v393_v17 = vpop.permute.xlu2 %392  ;;  %v289_v18 = vpop.permute.xlu1 %288 }
  0x9f   : > { %v301_v19 = vmul.f32 %v1107_v50, %v289_v18  ;;  %v284_v20 = vpop.permute.xlu0 %283  ;;  %v413_v47 = vmul.f32 %v1157_v39, %v393_v17  ;;  %v562_v49 = vmul.f32 %v1107_v50, %v393_v17  ;;  %v548_v17 = vmul.f32 %v1112_v51, %v1120_v63  ;;  %v1203_v63 = vld [vmem:[%s1309_s1 + $0x7] ss:$0 sm:$0xff] }
  0xa0   : > { %v300_v21 = vmul.f32 %v1107_v50, %v284_v20 }
  0xa1   : > { %v305_v23 = vadd.f32 %v301_v19, %v268_v14 }
  0xa2   : > { %v304_v24 = vadd.f32 %v300_v21, %v267_v4 }
  0xa3   : > { %v345_v25 = vadd.f32 %v341_v22, %v305_v23  ;;  %v1197_v22 = vld [vmem:[%s1309_s1 + $0x6] ss:$0 sm:$0xff] }
  0xa6   : > { %v1143_v27 = vpop.permute.xlu2 %407  ;;  %v324_v28 = vpop.permute.xlu1 %323 }
  0xa7   : > { %v340_v30 = vmul.f32 %v1132_v16, %v324_v28  ;;  %v547_v31 = vmul.f32 %v1112_v51, %v324_v28  ;;  %v319_v32 = vpop.permute.xlu0 %318  ;;  %v416_v60 = vmul.f32 %v1157_v39, %v1143_v27 }
  0xa8   : > { %v339_v33 = vmul.f32 %v1132_v16, %v319_v32  ;;  %v546_v41 = vmul.f32 %v1112_v51, %v319_v32 }
  0xa9   : > { %v344_v35 = vadd.f32 %v340_v30, %v304_v24  ;;  %v1150_v36 = vadd.f32 %v555_v29, %v547_v31 }
  0xaa   : > { %v343_v37 = vadd.f32 %v339_v33, %v303_v62 }
  0xab   : > { %v1152_v38 = vadd.f32 %v377_v34, %v344_v35 }
  0xae   : > { %v356_v40 = vpop.permute.xlu1 %355  ;;  %v443_v45 = vpop.permute.xlu2 %442 }
  0xaf   : > { %v376_v42 = vmul.f32 %v1141_v26, %v356_v40  ;;  %v554_v43 = vmul.f32 %v1101_v48, %v356_v40  ;;  %v334_v44 = vpop.permute.xlu0 %333  ;;  %v572_v30 = vmul.f32 %v1132_v16, %v443_v45  ;;  %v455_v33 = vmul.f32 %v1197_v22, %v443_v45 }
  0xb0   : > { %v342_v46 = vmul.f32 %v1132_v16, %v334_v44 }
  0xb1   : > { %v380_v52 = vadd.f32 %v376_v42, %v343_v37  ;;  %v558_v53 = vadd.f32 %v554_v43, %v546_v41  ;;  %v549_v42 = vmul.f32 %v1112_v51, %v334_v44 }
  0xb2   : > { %v346_v54 = vadd.f32 %v342_v46, %v306_v15 }
  0xb3   : > { %v1165_v55 = vadd.f32 %v413_v47, %v380_v52  ;;  %v1167_v56 = vadd.f32 %v562_v49, %v558_v53 }
  0xb6   : > { %v371_v57 = vpop.permute.xlu1 %370  ;;  %v475_v62 = vpop.permute.xlu2 %474 }
  0xb7   : > { %v379_v58 = vmul.f32 %v1141_v26, %v371_v57  ;;  %v366_v59 = vpop.permute.xlu0 %365  ;;  %v557_v34 = vmul.f32 %v1101_v48, %v371_v57  ;;  %v565_v57 = vmul.f32 %v1107_v50, %v1143_v27  ;;  %v579_v27 = vmul.f32 %v1141_v26, %v475_v62 }
  0xb8   : > { %v556_v13 = vmul.f32 %v1101_v48, %v366_v59  ;;  %v378_v15 = vmul.f32 %v1141_v26, %v366_v59  ;;  %v491_v59 = vmul.f32 %v1203_v63, %v475_v62 }
  0xb9   : > { %v383_v61 = vadd.f32 %v379_v58, %v346_v54  ;;  %v561_v52 = vadd.f32 %v557_v34, %v549_v42 }
  0xba   : > { %v560_v21 = vadd.f32 %v556_v13, %v548_v17  ;;  %v382_v23 = vadd.f32 %v378_v15, %v345_v25  ;;  %v1213_v25 = vld [vmem:[%s1309_s1 + $0x8] ss:$0 sm:$0xff] }
  0xbb   : > { %v1172_v0 = vadd.f32 %v416_v60, %v383_v61  ;;  %v569_v15 = vadd.f32 %v565_v57, %v561_v52 }
  0xbe   : > { %v403_v1 = vpop.permute.xlu1 %402  ;;  %v1174_v3 = vpop.permute.xlu2 %506 }
  0xbf   : > { %v398_v2 = vpop.permute.xlu0 %397  ;;  %v564_v18 = vmul.f32 %v1107_v50, %v403_v1  ;;  %v415_v19 = vmul.f32 %v1157_v39, %v403_v1 }
  0xc0   : > { %v563_v35 = vmul.f32 %v1107_v50, %v398_v2  ;;  %v414_v43 = vmul.f32 %v1157_v39, %v398_v2 }
  0xc1   : > { %v568_v24 = vadd.f32 %v564_v18, %v560_v21  ;;  %v419_v28 = vadd.f32 %v415_v19, %v382_v23 }
  0xc2   : > { %v567_v58 = vadd.f32 %v563_v35, %v1150_v36  ;;  %v418_v60 = vadd.f32 %v414_v43, %v1152_v38 }
  0xc3   : > { %v576_v37 = vadd.f32 %v572_v30, %v568_v24  ;;  %v459_v46 = vadd.f32 %v455_v33, %v419_v28 }
  0xc6   : > { %v438_v4 = vpop.permute.xlu1 %437  ;;  %v1176_v6 = vpop.permute.xlu2 %521 }
  0xc7   : > { %v433_v5 = vpop.permute.xlu0 %432  ;;  %v571_v45 = vmul.f32 %v1132_v16, %v438_v4  ;;  %v454_v53 = vmul.f32 %v1197_v22, %v438_v4 }
  0xc8   : > { %v570_v61 = vmul.f32 %v1132_v16, %v433_v5  ;;  %v453_v38 = vmul.f32 %v1197_v22, %v433_v5 }
  0xc9   : > { %v458_v36 = vadd.f32 %v454_v53, %v418_v60 }
  0xca   : > { %v574_v23 = vadd.f32 %v570_v61, %v1167_v56 }
  0xcb   : > { %v495_v56 = vadd.f32 %v491_v59, %v458_v36 }
  0xce   : > { %v1178_v7 = vpop.permute.xlu1 %469  ;;  %v1184_v11 = vpop.permute.xlu2 %618 }
  0xcf   : > { %v1180_v8 = vpop.permute.xlu0 %447  ;;  %v578_v62 = vmul.f32 %v1141_v26, %v1178_v7  ;;  %v490_v33 = vmul.f32 %v1203_v63, %v1178_v7 }
  0xd0   : > { %v573_v1 = vmul.f32 %v1132_v16, %v1180_v8  ;;  %v1240_v16 = vld [vmem:[%s1310_s2] ss:$0 sm:$0xff]  ;;  %v456_v34 = vmul.f32 %v1197_v22, %v1180_v8 }
  0xd1   : > { %v582_v42 = vadd.f32 %v578_v62, %v574_v23 }
  0xd2   : > { %v577_v24 = vadd.f32 %v573_v1, %v569_v15 }
  0xd6   : > { %v1182_v9 = vpop.permute.xlu1 %484  ;;  %v1192_v20 = vpop.permute.xlu2 %650 }
  0xd7   : > { %v480_v10 = vpop.permute.xlu0 %479  ;;  %v581_v17 = vmul.f32 %v1141_v26, %v1182_v9  ;;  %v493_v7 = vmul.f32 %v1203_v63, %v1182_v9 }
  0xd8   : > { %v580_v31 = vmul.f32 %v1141_v26, %v480_v10  ;;  %v492_v40 = vmul.f32 %v1203_v63, %v480_v10  ;;  %v575_v10 = vadd.f32 %v571_v45, %v567_v58  ;;  %v586_v26 = vmul.f32 %v1157_v39, %v1174_v3 }
  0xd9   : > { %v585_v35 = vadd.f32 %v581_v17, %v577_v24 }
  0xda   : > { %v584_v48 = vadd.f32 %v580_v31, %v576_v37  ;;  %v496_v51 = vadd.f32 %v492_v40, %v459_v46 }
  0xde   : > { %v517_v12 = vpop.permute.xlu1 %516  ;;  %v678_v54 = vpop.permute.xlu2 %677 }
  0xdf   : > { %v512_v14 = vpop.permute.xlu0 %511  ;;  %v588_v41 = vmul.f32 %v1157_v39, %v517_v12  ;;  %v529_v47 = vmul.f32 %v1213_v25, %v517_v12  ;;  %v687_v18 = vmul.f32 %v1213_v25, %v678_v54 }
  0xe0   : > { %v587_v19 = vmul.f32 %v1157_v39, %v512_v14  ;;  %v528_v28 = vmul.f32 %v1213_v25, %v512_v14  ;;  %v589_v14 = vmul.f32 %v1157_v39, %v1176_v6  ;;  %v460_v39 = vadd.f32 %v456_v34, %v1172_v0 }
  0xe1   : > { %v592_v44 = vadd.f32 %v588_v41, %v584_v48  ;;  %v533_v4 = vadd.f32 %v529_v47, %v496_v51  ;;  %v457_v41 = vadd.f32 %v453_v38, %v1165_v55  ;;  %v527_v51 = vmul.f32 %v1213_v25, %v1174_v3 }
  0xe2   : > { %v532_v43 = vadd.f32 %v528_v28, %v495_v56  ;;  %v593_v54 = vadd.f32 %v589_v14, %v585_v35  ;;  %v497_v59 = vadd.f32 %v493_v7, %v460_v39  ;;  %v590_v0 = vadd.f32 %v586_v26, %v582_v42  ;;  %v727_v26 = vld [vmem:[%s192_s4 + $0x4] sm:$0x7] }
  0xe3   : > { %v540_v5 = vadd.f32 %v1240_v16, %v533_v4  ;;  %v494_v53 = vadd.f32 %v490_v33, %v457_v41 }
  0xe4   : > { %v539_v60 = vadd.f32 %v1240_v16, %v532_v43 }
  0xe5   : > { %v544_v45 = vmax.f32 %v540_v5, 0.0 }
  0xe6   : > { %v614_v29 = vpop.permute.xlu1 %613  ;;  %v673_v46 = vpop.permute.xlu2 %672 }
  0xe7   : > { %v1206_v32 = vpop.permute.xlu0 %603  ;;  %v623_v49 = vmul.f32 %v1197_v22, %v614_v29  ;;  %v583_v29 = vadd.f32 %v579_v27, %v575_v10  ;;  %v686_v55 = vmul.f32 %v1213_v25, %v673_v46  ;;  %v531_v10 = vadd.f32 %v527_v51, %v494_v53 }
  0xe8   : > { %v621_v57 = vmul.f32 %v1197_v22, %v1206_v32  ;;  %v530_v32 = vmul.f32 %v1213_v25, %v1176_v6 }
  0xe9   : > { %v627_v12 = vadd.f32 %v623_v49, %v592_v44  ;;  %v591_v37 = vadd.f32 %v587_v19, %v583_v29  ;;  %v624_v44 = vmul.f32 %v1197_v22, %v1184_v11  ;;  %v656_v11 = vmul.f32 %v1203_v63, %v1192_v20 }
  0xea   : > { %v625_v4 = vadd.f32 %v621_v57, %v590_v0  ;;  %v538_v38 = vadd.f32 %v1240_v16, %v531_v10 }
  0xec   : > { %v542_v62 = vmax.f32 %v538_v38, 0.0 }
  0xee   : > { %v646_v2 = vpop.permute.xlu1 %645 }
  0xef   : > { %v655_v13 = vmul.f32 %v1203_v63, %v646_v2  ;;  %v609_v50 = vpop.permute.xlu0 %608  ;;  %v628_v2 = vadd.f32 %v624_v44, %v593_v54 }
  0xf0   : > { %v622_v31 = vmul.f32 %v1197_v22, %v609_v50  ;;  %v534_v22 = vadd.f32 %v530_v32, %v497_v59 }
  0xf1   : > { %v659_v21 = vadd.f32 %v655_v13, %v627_v12  ;;  %v543_v13 = vmax.f32 %v539_v60, 0.0  ;;  %v660_v6 = vadd.f32 %v656_v11, %v628_v2 }
  0xf2   : > { %v626_v47 = vadd.f32 %v622_v31, %v591_v37  ;;  %v541_v20 = vadd.f32 %v1240_v16, %v534_v22 }
  0xf3   : > { %v691_v30 = vadd.f32 %v687_v18, %v659_v21 }
  0xf4   : > { %v545_v28 = vmax.f32 %v541_v20, 0.0 }
  0xf5   : > { %v695_v40 = vadd.f32 %v1240_v16, %v691_v30 }
  0xf6   : > { %v641_v8 = vpop.permute.xlu1 %640 }
  0xf7   : > { %v699_v48 = vmax.f32 %v695_v40, 0.0  ;;  %v654_v49 = vmul.f32 %v1203_v63, %v641_v8  ;;  %v636_v52 = vpop.permute.xlu0 %635 }
  0xf8   : > { %v653_v1 = vmul.f32 %v1203_v63, %v636_v52 }
  0xf9   : > { %v703_v9 = vmax.f32 %v544_v45, %v699_v48  ;;  %v658_v58 = vadd.f32 %v654_v49, %v626_v47 }
  0xfa   : > { %v657_v27 = vadd.f32 %v653_v1, %v625_v4 }
  0xfb   : > { %708 = vst.msk [vmem:[#allocation2 + $0x10] sm:$0xff] %vm705_vm0, %v703_v9  ;;  %v690_v61 = vadd.f32 %v686_v55, %v658_v58 }
  0xfd   : > { %v694_v3 = vadd.f32 %v1240_v16, %v690_v61 }
  0xfe   : > { %v668_v12 = vpop.permute.xlu1 %667 }
  0xff   : > { %v698_v50 = vmax.f32 %v694_v3, 0.0  ;;  %v685_v36 = vmul.f32 %v1213_v25, %v668_v12  ;;  %v683_v15 = vpop.permute.xlu0 %682 }
 0x100   : > { %v688_v17 = vmul.f32 %v1213_v25, %v683_v15 }
 0x101   : > { %v702_v18 = vmax.f32 %v543_v13, %v698_v50  ;;  %v689_v19 = vadd.f32 %v685_v36, %v657_v27 }
 0x102   : > { %v692_v63 = vadd.f32 %v688_v17, %v660_v6 }
 0x103   : > { %707 = vst.msk [vmem:[#allocation2 + $0x8] sm:$0xff] %vm705_vm0, %v702_v18  ;;  %v693_v21 = vadd.f32 %v1240_v16, %v689_v19 }
 0x104   : > { %v696_v23 = vadd.f32 %v1240_v16, %v692_v63 }
 0x105   : > { %v697_v24 = vmax.f32 %v693_v21, 0.0 }
 0x106   : > { %v700_v5 = vmax.f32 %v696_v23, 0.0 }
 0x107   : > { %v701_v25 = vmax.f32 %v542_v62, %v697_v24 }
 0x108   : > { %v704_v29 = vmax.f32 %v545_v28, %v700_v5 }
 0x109   : > { %706 = vst.msk [vmem:[#allocation2] sm:$0xff] %vm705_vm0, %v701_v25 }
 0x10a   : > { %710 = vst.msk [vmem:[#allocation2 + $0x18] sm:$0x3] %vm709_vm1, %v704_v29 }
 0x110   : > { %v711_v16 = vld [vmem:[#allocation2] ss:$2 sm:$0xff]  ;;  %v715_v30 = vld [vmem:[#allocation2 + $0x1] ss:$2 sm:$0xff] }
 0x111   : > { %v718_v31 = vmax.f32 %v711_v16, %v715_v30  ;;  %v713_v33 = vld [vmem:[#allocation2 + $0x10] ss:$2 sm:$0x1f]  ;;  %v717_v34 = vld [vmem:[#allocation2 + $0x11] ss:$2 sm:$0x1f] }
 0x112   : > { %v719_v35 = vmax.f32 %v713_v33, %v717_v34 }
 0x113   : > { %v720_v56 = vpack.c.bf16 %v718_v31, %v718_v31 }
 0x114   : > { %v721_v14 = vpack.c.bf16 %v719_v35, %v719_v35 }
 0x115   : > { %723 = vst.msk [vmem:[%s192_s4] sm:$0xf] %vm722_vm4, %v720_v56 }
 0x116   : > { %v728_v37 = vsel %vm726_vm5, %v721_v14, %v727_v26 }
 0x117   : > { %729 = vst [vmem:[%s192_s4 + $0x4] sm:$0x7] %v728_v37 }
 0x118 PF: > { %s13_s16 = sadd.s32 1, %s990_s16   ;;  %s1312_s12 = smov %s982_s14 }
 0x119   : > { %p10_p7 = scmp.ge.s32.totalorder %s13_s16, 28   ;;  %s1313_s13 = smov %s986_s15 }
 0x11a   : > { %s1314_s14 = smov %s1317_s17  ;;  %s1315_s15 = smov %s1321_s18 }
 0x11b   :  { %12 = sbr.rel (!%p10_p7) target bundleno = 3 (0x3), region = 77 }

// kernel: number_cnn_forward.4
= control target key start
LH: loop header
LB: loop body
LE: loop exit
PB: predicated region body
PF: predicated region fallthrough
CT: control target
= control target key end

     0   :  { %s1202_s12 = smov 0   ;;  %s1204_s13 = smov 0   ;;  %s1399_s0 = inlined_call_operand.vmem [shape: bf16[2,13,13,32], index: 0, kind: input, shape index: {}]   ;;  %s1400_s1 = inlined_call_operand.vmem [shape: bf16[9,32,64], index: 1, kind: input, shape index: {}]   ;;  %s1401_s2 = inlined_call_operand.vmem [shape: f32[1,64], index: 2, kind: input, shape index: {}]   ;;  %s1402_s3 = inlined_call_operand.vmem [shape: bf16[2,5,5,64], index: 3, kind: output, shape index: {}]  }
   0x1   :  { %s1206_s14 = smov 0   ;;  %s1208_s15 = smov 0  }
   0x2   :  { %s1210_s16 = smov 0  }
   0x3 LB: > { %s22_s17 = sadd.s32 1, %s1172_s14  ;;  %s25_s18 = sadd.s32 1, %s1176_s15  ;;  %s1180_s16 = sphi %s1210_s16, %s13_s16   ;;  %s1176_s15 = sphi %s1208_s15, %s1406_s15   ;;  %s1172_s14 = sphi %s1206_s14, %s1405_s14   ;;  %s1168_s13 = sphi %s1204_s13, %s1404_s13   ;;  %s1164_s12 = sphi %s1202_s12, %s1403_s12  }
   0x4   : > { %p23_p0 = scmp.ge.s32.totalorder %s22_s17, 5  ;;  %p888_p1 = scmp.ge.s32.totalorder %s1180_s16, 1 }
   0x5   : > { %p151_p2 = scmp.lt.s32.totalorder %s1180_s16, 11 }
   0x6   : > { %s1408_s17 = smov (%p23_p0, %s22_s17), 0  ;;  %s1410_s18 = smov (!%p23_p0, %s25_s18), %s1176_s15 }
   0x7   : > { %p152_p3 = pnand %p888_p1, %p151_p2  ;;  %p27_p4 = scmp.ge.s32.totalorder %s1410_s18, 2 }
   0x8   : > { %p178_p5 = scmp.lt.s32.totalorder (!%p152_p3), %s1168_s13, 1  ;;  %s1069_s9 = sshll.u32 (!%p152_p3), %s1164_s12, 4 }
   0x9   : > { %s1412_s18 = smov (%p27_p4, %s1410_s18), 0  ;;  %155 = sbr.rel (%p152_p3) target bundleno = 251 (0xfb), region = 32 }
   0xa   : > { %p185_p6 = scmp.lt.s32.totalorder (!%p152_p3), %s1164_s12, 4 }
   0xe   : > { %v1072_v0 = vld [vmem:[%s1400_s1 + $0x8] sm:$0xff]  ;;  %v1245_v2 = vld [vmem:[%s1400_s1 + $0x38] sm:$0xff]  ;;  %v1254_v4 = vld [vmem:[%s1400_s1] sm:$0xff]  ;;  %s1414_s13 = smov (!%p178_p5, %s1168_s13), 1  ;;  %vm232_vm0 = vcmask 261120   ;;  %vm775_vm1 = vcmask 523264  }
   0xf   : > { %v1240_v1 = vld [vmem:[%s1400_s1 + $0x28] sm:$0xff]  ;;  %v1074_v3 = vld [vmem:[%s1400_s1 + $0x18] sm:$0xff]  ;;  %270 = vmatpush.bf16.msra.mxu1 %v1072_v0  ;;  %v1259_v5 = vld [vmem:[%s1400_s1 + $0x20] sm:$0xff]  ;;  %359 = vmatpush.bf16.msra.mxu3 %v1245_v2  ;;  %s1099_s8 = smul.u32 104, %s1414_s13  ;;  %s1416_s12 = smov (!%p185_p6, %s1164_s12), 4  ;;  %vm777_vm2 = vcmask 518144  }
  0x10   : > { %312 = vmatpush.bf16.msra.mxu2 %v1240_v1  ;;  %242 = vmatpush.bf16.msra.mxu0 %v1074_v3  ;;  %v1267_v6 = vld [vmem:[%s1400_s1 + $0x30] sm:$0xff]  ;;  %v1277_v8 = vld [vmem:[%s1400_s1 + $0x48] sm:$0xff]  ;;  %v1282_v9 = vld [vmem:[%s1400_s1 + $0x58] sm:$0xff]  ;;  %s1100_s23 = smul.u32 5, %s1414_s13  ;;  %vm785_vm3 = vsmask.f32 2304 }
  0x11   : > { %v1073_v7 = vld [vmem:[%s1400_s1 + $0x10] sm:$0xff]  ;;  %v1287_v10 = vld [vmem:[%s1400_s1 + $0x68] sm:$0xff]  ;;  %v1292_v11 = vld [vmem:[%s1400_s1 + $0x78] sm:$0xff]  ;;  %s182_s27 = scalar_lea.vmem %s1399_s0, %s1099_s8 }
  0x12   : > { %s1299_s28 = scalar_lea.vmem %s182_s27, %s1069_s9  ;;  %v1305_v12 = vld [vmem:[%s1400_s1 + $0x50] sm:$0xff]  ;;  %v1082_v13 = vld [vmem:[%s1400_s1 + $0x40] sm:$0xff]  ;;  %v1095_v32 = vld [vmem:[%s1400_s1 + $0x88] sm:$0xff]  ;;  %s188_s24 = sadd.s32 %s1100_s23, %s1416_s12 }
  0x13   : > { %271 = vmatpush.bf16.msra.mxu1 %v1254_v4  ;;  %360 = vmatpush.bf16.msra.mxu3 %v1267_v6  ;;  %v1089_v14 = vld [vmem:[%s1400_s1 + $0x60] sm:$0xff]  ;;  %v947_v20 = vld [vmem:[%s1299_s28 + $0x8] sm:$0xf]  ;;  %v1079_v21 = vld [vmem:[%s1299_s28 + $0x8] sm:$0x30]  ;;  %s890_s25 = sshll.u32 %s188_s24, 2 }
  0x14   : > { %313 = vmatpush.bf16.msra.mxu2 %v1259_v5  ;;  %243 = vmatpush.bf16.msra.mxu0 %v1073_v7  ;;  %v900_v15 = vld [vmem:[%s1299_s28] sm:$0xf]  ;;  %v1070_v16 = vld [vmem:[%s1299_s28] sm:$0x30]  ;;  %v948_v23 = vor.u32 %v1079_v21, %v947_v20  ;;  %v1326_v24 = vld [vmem:[%s1400_s1 + $0x70] sm:$0xff] }
  0x15   : > { %v926_v17 = vld [vmem:[%s1299_s28] sm:$0xe]  ;;  %v901_v18 = vor.u32 %v1070_v16, %v900_v15  ;;  %v1075_v19 = vld [vmem:[%s1299_s28] sm:$0x70]  ;;  %v1000_v25 = vld [vmem:[%s1299_s28 + $0x10] sm:$0xf] }
  0x16   : > { %v927_v22 = vor.u32 %v1075_v19, %v926_v17  ;;  %v1088_v28 = vld [vmem:[%s1299_s28 + $0x10] sm:$0x30]  ;;  %957 = vmatmul.msk.bf16.vlgmr.msra.gmra.mxu3 %vm232_vm0, %v948_v23  ;;  %v979_v34 = vld [vmem:[%s1299_s28 + $0x8] sm:$0xe]  ;;  %v1084_v35 = vld [vmem:[%s1299_s28 + $0x8] sm:$0x70] }
  0x17   : > { %445 = vmatpush.bf16.msrb.mxu1 %v1282_v9  ;;  %534 = vmatpush.bf16.msrb.mxu3 %v1292_v11  ;;  %v214_v26 = vshrl.u32 %v901_v18, 16  ;;  %v216_v27 = vshll.u32 %v901_v18, 16  ;;  %v1001_v30 = vor.u32 %v1088_v28, %v1000_v25  ;;  %v1094_v37 = vld [vmem:[%s1400_s1 + $0x80] sm:$0xff]  ;;  %v980_v38 = vor.u32 %v1084_v35, %v979_v34  ;;  %v1032_v47 = vld [vmem:[%s1299_s28 + $0x10] sm:$0xe]  ;;  %vm786_vm4 = vmand %vm777_vm2, %vm785_vm3 }
  0x18   : > { %401 = vmatpush.bf16.msrb.mxu0 %v1277_v8  ;;  %492 = vmatpush.bf16.msrb.mxu2 %v1287_v10  ;;  %v290_v29 = vrot.slane %v927_v22, 1  ;;  %v376_v41 = vshll.u32 %v948_v23, 16  ;;  %v374_v44 = vshrl.u32 %v948_v23, 16  ;;  %v1093_v48 = vld [vmem:[%s1299_s28 + $0x10] sm:$0x70] }
  0x19   : > { %919 = vmatmul.msk.bf16.vlgmr.msra.gmra.mxu1 %vm232_vm0, %v901_v18  ;;  %v218_v31 = vrot.slane %v216_v27, 1  ;;  %v509_v36 = vshll.u32 %v1001_v30, 16  ;;  %v507_v39 = vshrl.u32 %v1001_v30, 16  ;;  %v423_v42 = vrot.slane %v980_v38, 1  ;;  %v1055_v51 = vld [vmem:[%s1299_s28 + $0x18] sm:$0xf] }
  0x1a   : > { %936 = vmatmul.msk.bf16.vlgmr.msra.gmra.mxu2 %vm232_vm0, %v290_v29  ;;  %v378_v45 = vrot.slane %v376_v41, 1  ;;  %v1033_v49 = vor.u32 %v1093_v48, %v1032_v47  ;;  %v1097_v52 = vld [vmem:[%s1299_s28 + $0x18] sm:$0x30]  ;;  %v1063_v54 = vld [vmem:[%s1299_s28 + $0x18] sm:$0xe] }
  0x1b   : > { %446 = vmatpush.bf16.msrb.mxu1 %v1305_v12  ;;  %535 = vmatpush.bf16.msrb.mxu3 %v1326_v24  ;;  %v219_v33 = vor.u32 %v218_v31, %v214_v26  ;;  %v511_v40 = vrot.slane %v509_v36, 1  ;;  %v1056_v53 = vor.u32 %v1097_v52, %v1055_v51  ;;  %v1098_v55 = vld [vmem:[%s1299_s28 + $0x18] sm:$0x70]  ;;  %s190_s28 = scalar_lea.vmem %s1402_s3, %s890_s25 }
  0x1c   : > { %402 = vmatpush.bf16.msrb.mxu0 %v1082_v13  ;;  %493 = vmatpush.bf16.msrb.mxu2 %v1089_v14  ;;  %v379_v46 = vor.u32 %v378_v45, %v374_v44  ;;  %v556_v50 = vrot.slane %v1033_v49, 1  ;;  %v1064_v56 = vor.u32 %v1098_v55, %v1063_v54  ;;  %v1141_v49 = vld [vmem:[%s1401_s2] ss:$0 sm:$0xff] }
  0x1d   : > { %910 = vmatmul.msk.bf16.vlgmr.msra.gmra.mxu0 %vm232_vm0, %v219_v33  ;;  %v512_v43 = vor.u32 %v511_v40, %v507_v39  ;;  %v719_v57 = vshll.u32 %v1056_v53, 16  ;;  %v717_v59 = vshrl.u32 %v1056_v53, 16 }
  0x1e   : > { %v749_v58 = vrot.slane %v1064_v56, 1 }
  0x1f   : > { %601 = vmatpush.bf16.msra.mxu1 %v1074_v3  ;;  %629 = vmatpush.bf16.msra.mxu3 %v1240_v1  ;;  %v721_v60 = vrot.slane %v719_v57, 1 }
  0x20   : > { %615 = vmatpush.bf16.msra.mxu2 %v1072_v0  ;;  %578 = vmatpush.bf16.msra.mxu0 %v1095_v32 }
  0x21   : > { %v722_v61 = vor.u32 %v721_v60, %v717_v59 }
  0x23   : > { %602 = vmatpush.bf16.msra.mxu1 %v1073_v7  ;;  %630 = vmatpush.bf16.msra.mxu3 %v1259_v5 }
  0x24   : > { %616 = vmatpush.bf16.msra.mxu2 %v1254_v4  ;;  %579 = vmatpush.bf16.msra.mxu0 %v1094_v37 }
  0x26   : > { %1023 = vmatmul.msk.bf16.vlgmr.msrb.gmra.mxu3 %vm232_vm0, %v512_v43 }
  0x27   : > { %707 = vmatpush.bf16.msrb.mxu3 %v1287_v10 }
  0x29   : > { %989 = vmatmul.msk.bf16.vlgmr.msrb.gmra.mxu1 %vm232_vm0, %v423_v42 }
  0x2a   : > { %661 = vmatpush.bf16.msrb.mxu1 %v1277_v8  ;;  %1010 = vmatmul.msk.bf16.vlgmr.msrb.gmra.mxu2 %vm232_vm0, %v1001_v30 }
  0x2b   : > { %677 = vmatpush.bf16.msrb.mxu2 %v1282_v9  ;;  %708 = vmatpush.bf16.msrb.mxu3 %v1089_v14 }
  0x2d   : > { %970 = vmatmul.msk.bf16.vlgmr.msrb.gmra.mxu0 %vm232_vm0, %v379_v46 }
  0x2e   : > { %662 = vmatpush.bf16.msrb.mxu1 %v1082_v13  ;;  %645 = vmatpush.bf16.msrb.mxu0 %v1245_v2 }
  0x2f   : > { %678 = vmatpush.bf16.msrb.mxu2 %v1305_v12 }
  0x32   : > { %646 = vmatpush.bf16.msrb.mxu0 %v1267_v6 }
  0x36   : > { %1045 = vmatmul.msk.bf16.vlgmr.msra.gmra.mxu3 %vm232_vm0, %v423_v42 }
  0x39   : > { %1043 = vmatmul.msk.bf16.vlgmr.msra.gmra.mxu1 %vm232_vm0, %v379_v46 }
  0x3a   : > { %759 = vmatpush.bf16.msra.mxu1 %v1095_v32  ;;  %1044 = vmatmul.msk.bf16.vlgmr.msra.gmra.mxu2 %vm232_vm0, %v948_v23 }
  0x3d   : > { %1042 = vmatmul.msk.bf16.vlgmr.msra.gmra.mxu0 %vm232_vm0, %v556_v50 }
  0x3e   : > { %760 = vmatpush.bf16.msra.mxu1 %v1094_v37  ;;  %732 = vmatpush.bf16.msra.mxu0 %v1292_v11 }
  0x42   : > { %733 = vmatpush.bf16.msra.mxu0 %v1326_v24 }
  0x46   : > { %1057 = vmatmul.msk.bf16.vlgmr.msrb.gmra.mxu3 %vm232_vm0, %v1056_v53 }
  0x49   : > { %1047 = vmatmul.msk.bf16.vlgmr.msrb.gmra.mxu1 %vm232_vm0, %v512_v43 }
  0x4a   : > { %1048 = vmatmul.msk.bf16.vlgmr.msrb.gmra.mxu2 %vm232_vm0, %v556_v50 }
  0x4d   : > { %1046 = vmatmul.msk.bf16.vlgmr.msrb.gmra.mxu0 %vm232_vm0, %v1001_v30 }
  0x59   : > { %1065 = vmatmul.msk.bf16.vlgmr.msra.gmra.mxu1 %vm232_vm0, %v749_v58 }
  0x5d   : > { %1058 = vmatmul.msk.bf16.vlgmr.msra.gmra.mxu0 %vm232_vm0, %v722_v61 }
  0x96   : > { %v273_v62 = vpop.f32.mrf.mxu1 }
  0x99   : > { %v362_v0 = vpop.f32.mrf.mxu3 }
  0x9a   : > { %v245_v63 = vpop.f32.mrf.mxu0 }
  0x9b   : > { %v274_v18 = vadd.f32 %v273_v62, %v245_v63 }
  0x9d   : > { %v315_v2 = vpop.f32.mrf.mxu2 }
  0x9e   : > { %v275_v1 = vpop.f32.mrf.mxu1  ;;  %v320_v21 = vadd.f32 %v315_v2, %v274_v18 }
  0xa0   : > { %v367_v25 = vadd.f32 %v362_v0, %v320_v21 }
  0xa1   : > { %v364_v5 = vpop.f32.mrf.mxu3 }
  0xa2   : > { %v247_v3 = vpop.f32.mrf.mxu0 }
  0xa3   : > { %v276_v26 = vadd.f32 %v275_v1, %v247_v3 }
  0xa5   : > { %v317_v6 = vpop.f32.mrf.mxu2 }
  0xa6   : > { %v448_v4 = vpop.f32.mrf.mxu1  ;;  %v321_v31 = vadd.f32 %v317_v6, %v276_v26 }
  0xa8   : > { %v368_v37 = vadd.f32 %v364_v5, %v321_v31 }
  0xa9   : > { %v537_v10 = vpop.f32.mrf.mxu3 }
  0xaa   : > { %v404_v7 = vpop.f32.mrf.mxu0 }
  0xab   : > { %v409_v28 = vadd.f32 %v404_v7, %v367_v25 }
  0xad   : > { %v495_v9 = vpop.f32.mrf.mxu2  ;;  %v453_v33 = vadd.f32 %v448_v4, %v409_v28 }
  0xae   : > { %v450_v8 = vpop.f32.mrf.mxu1 }
  0xaf   : > { %v500_v40 = vadd.f32 %v495_v9, %v453_v33 }
  0xb1   : > { %v539_v14 = vpop.f32.mrf.mxu3  ;;  %v542_v46 = vadd.f32 %v537_v10, %v500_v40 }
  0xb2   : > { %v406_v11 = vpop.f32.mrf.mxu0 }
  0xb3   : > { %v410_v41 = vadd.f32 %v406_v11, %v368_v37 }
  0xb5   : > { %v497_v13 = vpop.f32.mrf.mxu2  ;;  %v454_v47 = vadd.f32 %v450_v8, %v410_v41 }
  0xb6   : > { %v604_v12 = vpop.f32.mrf.mxu1 }
  0xb7   : > { %v501_v55 = vadd.f32 %v497_v13, %v454_v47 }
  0xb9   : > { %v632_v19 = vpop.f32.mrf.mxu3  ;;  %v543_v61 = vadd.f32 %v539_v14, %v501_v55 }
  0xba   : > { %v581_v15 = vpop.f32.mrf.mxu0 }
  0xbb   : > { %v586_v48 = vadd.f32 %v581_v15, %v542_v46 }
  0xbd   : > { %v618_v17 = vpop.f32.mrf.mxu2  ;;  %v591_v57 = vadd.f32 %v1141_v49, %v586_v48 }
  0xbe   : > { %v606_v16 = vpop.f32.mrf.mxu1  ;;  %v619_v23 = vadd.f32 %v618_v17, %v604_v12 }
  0xbf   : > { %v593_v63 = vmax.f32 %v591_v57, 0.0 }
  0xc0   : > { %v637_v29 = vadd.f32 %v632_v19, %v619_v23 }
  0xc1   : > { %v634_v30 = vpop.f32.mrf.mxu3 }
  0xc2   : > { %v583_v20 = vpop.f32.mrf.mxu0 }
  0xc3   : > { %v587_v0 = vadd.f32 %v583_v20, %v543_v61 }
  0xc5   : > { %v620_v24 = vpop.f32.mrf.mxu2  ;;  %v592_v7 = vadd.f32 %v1141_v49, %v587_v0 }
  0xc6   : > { %v664_v22 = vpop.f32.mrf.mxu1  ;;  %v621_v34 = vadd.f32 %v620_v24, %v606_v16  ;;  %v787_v16 = vld [vmem:[%s190_s28] sm:$0x7] }
  0xc7   : > { %v594_v10 = vmax.f32 %v592_v7, 0.0 }
  0xc8   : > { %v638_v42 = vadd.f32 %v634_v30, %v621_v34 }
  0xc9   : > { %v710_v43 = vpop.f32.mrf.mxu3 }
  0xca   : > { %v648_v27 = vpop.f32.mrf.mxu0 }
  0xcb   : > { %v653_v32 = vadd.f32 %v648_v27, %v637_v29 }
  0xcd   : > { %v680_v36 = vpop.f32.mrf.mxu2  ;;  %v669_v38 = vadd.f32 %v664_v22, %v653_v32 }
  0xce   : > { %v666_v35 = vpop.f32.mrf.mxu1 }
  0xcf   : > { %v685_v44 = vadd.f32 %v680_v36, %v669_v38 }
  0xd1   : > { %v715_v50 = vadd.f32 %v710_v43, %v685_v44  ;;  %v712_v60 = vpop.f32.mrf.mxu3 }
  0xd2   : > { %v650_v39 = vpop.f32.mrf.mxu0 }
  0xd3   : > { %v654_v45 = vadd.f32 %v650_v39, %v638_v42 }
  0xd5   : > { %v670_v52 = vadd.f32 %v666_v35, %v654_v45  ;;  %v682_v53 = vpop.f32.mrf.mxu2 }
  0xd6   : > { %v762_v51 = vpop.f32.mrf.mxu1 }
  0xd7   : > { %v686_v58 = vadd.f32 %v682_v53, %v670_v52 }
  0xd9   : > { %v716_v1 = vadd.f32 %v712_v60, %v686_v58 }
  0xda   : > { %v735_v54 = vpop.f32.mrf.mxu0 }
  0xdb   : > { %v740_v56 = vadd.f32 %v735_v54, %v715_v50 }
  0xdd   : > { %v767_v59 = vadd.f32 %v762_v51, %v740_v56 }
  0xde   : > { %v764_v6 = vpop.f32.mrf.mxu1 }
  0xdf   : > { %v769_v62 = vadd.f32 %v1141_v49, %v767_v59 }
  0xe1   : > { %v771_v2 = vmax.f32 %v769_v62, 0.0 }
  0xe2   : > { %v737_v3 = vpop.f32.mrf.mxu0 }
  0xe3   : > { %v773_v4 = vmax.f32 %v593_v63, %v771_v2  ;;  %v741_v5 = vadd.f32 %v737_v3, %v716_v1 }
  0xe5   : > { %776 = vst.msk [vmem:[#allocation2] sm:$0xff] %vm775_vm1, %v773_v4  ;;  %v768_v8 = vadd.f32 %v764_v6, %v741_v5 }
  0xe7   : > { %v770_v9 = vadd.f32 %v1141_v49, %v768_v8 }
  0xe9   : > { %v772_v11 = vmax.f32 %v770_v9, 0.0 }
  0xeb   : > { %v774_v12 = vmax.f32 %v594_v10, %v772_v11 }
  0xed   : > { %778 = vst.msk [vmem:[#allocation2 + $0x8] sm:$0x7] %vm777_vm2, %v774_v12 }
  0xf4   : > { %v779_v13 = vld [vmem:[#allocation2] ss:$2 sm:$0x1f]  ;;  %v781_v14 = vld [vmem:[#allocation2 + $0x1] ss:$2 sm:$0x1f] }
  0xf5   : > { %v782_v15 = vmax.f32 %v779_v13, %v781_v14 }
  0xf7   : > { %v783_v17 = vpack.c.bf16 %v782_v15, %v782_v15 }
  0xf9   : > { %v788_v18 = vsel %vm786_vm4, %v783_v17, %v787_v16 }
  0xfa   : > { %789 = vst [vmem:[%s190_s28] sm:$0x7] %v788_v18 }
  0xfb PF: > { %s13_s16 = sadd.s32 1, %s1180_s16   ;;  %s1403_s12 = smov %s1172_s14 }
  0xfc   : > { %p10_p7 = scmp.ge.s32.totalorder %s13_s16, 12   ;;  %s1404_s13 = smov %s1176_s15 }
  0xfd   : > { %s1405_s14 = smov %s1408_s17  ;;  %s1406_s15 = smov %s1412_s18 }
  0xfe   :  { %12 = sbr.rel (!%p10_p7) target bundleno = 3 (0x3), region = 75 }

// kernel: number_cnn_forward.5
= control target key start
LH: loop header
LB: loop body
LE: loop exit
PB: predicated region body
PF: predicated region fallthrough
CT: control target
= control target key end

     0   :  { %vm904_vm0 = vcmask 523264   ;;  %s2233_s1 = inlined_call_operand.vmem [shape: bf16[1600,128], index: 1, kind: input, shape index: {}]   ;;  %s2234_s2 = inlined_call_operand.vmem [shape: f32[1,128], index: 2, kind: input, shape index: {}]   ;;  %s2235_s0 = inlined_call_operand.vmem [shape: bf16[16,1600], index: 0, kind: input, shape index: {}]   ;;  %s2236_s4 = inlined_call_operand.vmem [shape: f32[1,128], index: 4, kind: input, shape index: {}]   ;;  %s2237_s3 = inlined_call_operand.vmem [shape: bf16[128,128], index: 3, kind: input, shape index: {}]   ;;  %s2238_s5 = inlined_call_operand.vmem [shape: f32[16,128], index: 5, kind: output, shape index: {}]  }
   0x1   :  { %v1686_v0 = vld [vmem:[%s2233_s1 + $0x38] sm:$0xff]  ;;  %v1685_v4 = vld [vmem:[%s2233_s1 + $0x30] sm:$0xff]  ;;  %v1684_v8 = vld [vmem:[%s2233_s1 + $0x28] sm:$0xff] }
   0x2   :  { %v1702_v1 = vld [vmem:[%s2233_s1 + $0xb8] sm:$0xff]  ;;  %908 = vmatpush.bf16.msra.mxu0 %v1686_v0  ;;  %v1701_v5 = vld [vmem:[%s2233_s1 + $0xb0] sm:$0xff]  ;;  %v1700_v9 = vld [vmem:[%s2233_s1 + $0xa8] sm:$0xff] }
   0x3   :  { %v1710_v2 = vld [vmem:[%s2233_s1 + $0xf8] sm:$0xff]  ;;  %936 = vmatpush.bf16.msra.mxu2 %v1702_v1  ;;  %v1709_v6 = vld [vmem:[%s2233_s1 + $0xf0] sm:$0xff]  ;;  %v1708_v10 = vld [vmem:[%s2233_s1 + $0xe8] sm:$0xff] }
   0x4   :  { %v1694_v3 = vld [vmem:[%s2233_s1 + $0x78] sm:$0xff]  ;;  %950 = vmatpush.bf16.msra.mxu3 %v1710_v2  ;;  %v1693_v7 = vld [vmem:[%s2233_s1 + $0x70] sm:$0xff]  ;;  %v1692_v11 = vld [vmem:[%s2233_s1 + $0x68] sm:$0xff] }
   0x5   :  { %922 = vmatpush.bf16.msra.mxu1 %v1694_v3  ;;  %v1683_v12 = vld [vmem:[%s2233_s1 + $0x20] sm:$0xff]  ;;  %v1682_v16 = vld [vmem:[%s2233_s1 + $0x18] sm:$0xff]  ;;  %v1681_v20 = vld [vmem:[%s2233_s1 + $0x10] sm:$0xff] }
   0x6   :  { %909 = vmatpush.bf16.msra.mxu0 %v1685_v4  ;;  %v1699_v13 = vld [vmem:[%s2233_s1 + $0xa0] sm:$0xff]  ;;  %v1698_v17 = vld [vmem:[%s2233_s1 + $0x98] sm:$0xff]  ;;  %v1697_v21 = vld [vmem:[%s2233_s1 + $0x90] sm:$0xff] }
   0x7   :  { %937 = vmatpush.bf16.msra.mxu2 %v1701_v5  ;;  %v1707_v14 = vld [vmem:[%s2233_s1 + $0xe0] sm:$0xff]  ;;  %v1706_v18 = vld [vmem:[%s2233_s1 + $0xd8] sm:$0xff]  ;;  %v1705_v22 = vld [vmem:[%s2233_s1 + $0xd0] sm:$0xff] }
   0x8   :  { %951 = vmatpush.bf16.msra.mxu3 %v1709_v6  ;;  %v1691_v15 = vld [vmem:[%s2233_s1 + $0x60] sm:$0xff]  ;;  %v1690_v19 = vld [vmem:[%s2233_s1 + $0x58] sm:$0xff]  ;;  %v1689_v23 = vld [vmem:[%s2233_s1 + $0x50] sm:$0xff] }
   0x9   :  { %923 = vmatpush.bf16.msra.mxu1 %v1693_v7  ;;  %v1680_v24 = vld [vmem:[%s2233_s1 + $0x8] sm:$0xff]  ;;  %v1679_v28 = vld [vmem:[%s2233_s1] sm:$0xff]  ;;  %v1718_v31 = vld [vmem:[%s2233_s1 + $0x138] sm:$0xff] }
   0xa   :  { %910 = vmatpush.bf16.msra.mxu0 %v1684_v8  ;;  %v1696_v25 = vld [vmem:[%s2233_s1 + $0x88] sm:$0xff]  ;;  %v1695_v29 = vld [vmem:[%s2233_s1 + $0x80] sm:$0xff]  ;;  %v1672_v33 = vld [vmem:[%s2235_s0 + $0x30] sm:$0xf0] }
   0xb   :  { %938 = vmatpush.bf16.msra.mxu2 %v1700_v9  ;;  %v1704_v26 = vld [vmem:[%s2233_s1 + $0xc8] sm:$0xff]  ;;  %v1703_v30 = vld [vmem:[%s2233_s1 + $0xc0] sm:$0xff]  ;;  %v1734_v34 = vld [vmem:[%s2233_s1 + $0x1b8] sm:$0xff] }
   0xc   :  { %952 = vmatpush.bf16.msra.mxu3 %v1708_v10  ;;  %v1688_v27 = vld [vmem:[%s2233_s1 + $0x48] sm:$0xff]  ;;  %v1183_v32 = vld [vmem:[%s2235_s0] sm:$0xf]  ;;  %v1673_v36 = vld [vmem:[%s2235_s0 + $0x38] sm:$0xf0] }
   0xd   :  { %924 = vmatpush.bf16.msra.mxu1 %v1692_v11  ;;  %v1191_v35 = vld [vmem:[%s2235_s0 + $0x8] sm:$0xf]  ;;  %v1742_v37 = vld [vmem:[%s2233_s1 + $0x1f8] sm:$0xff]  ;;  %v1667_v38 = vld [vmem:[%s2235_s0 + $0xc] sm:$0xf]  ;;  %v1184_v41 = vor.u32 %v1672_v33, %v1183_v32 }
   0xe   :  { %911 = vmatpush.bf16.msra.mxu0 %v1683_v12  ;;  %v1193_v39 = vld [vmem:[%s2235_s0 + $0x3c] sm:$0xf0]  ;;  %v1726_v42 = vld [vmem:[%s2233_s1 + $0x178] sm:$0xff]  ;;  %v1192_v43 = vor.u32 %v1673_v36, %v1191_v35  ;;  %v1666_v44 = vld [vmem:[%s2235_s0 + $0x4] sm:$0xf] }
   0xf   :  { %939 = vmatpush.bf16.msra.mxu2 %v1699_v13  ;;  %v1687_v40 = vld [vmem:[%s2233_s1 + $0x40] sm:$0xff]  ;;  %v1185_v45 = vld [vmem:[%s2235_s0 + $0x34] sm:$0xf0]  ;;  %v1717_v46 = vld [vmem:[%s2233_s1 + $0x130] sm:$0xff]  ;;  %v1196_v47 = vor.u32 %v1667_v38, %v1193_v39 }
  0x10   :  { %953 = vmatpush.bf16.msra.mxu3 %v1707_v14  ;;  %v1733_v48 = vld [vmem:[%s2233_s1 + $0x1b0] sm:$0xff]  ;;  %v1188_v50 = vor.u32 %v1666_v44, %v1185_v45  ;;  %v1716_v52 = vld [vmem:[%s2233_s1 + $0x128] sm:$0xff]  ;;  %v1715_v56 = vld [vmem:[%s2233_s1 + $0x120] sm:$0xff] }
  0x11   :  { %925 = vmatpush.bf16.msra.mxu1 %v1691_v15  ;;  %v1741_v49 = vld [vmem:[%s2233_s1 + $0x1f0] sm:$0xff]  ;;  %v1732_v53 = vld [vmem:[%s2233_s1 + $0x1a8] sm:$0xff]  ;;  %v1731_v57 = vld [vmem:[%s2233_s1 + $0x1a0] sm:$0xff] }
  0x12   :  { %912 = vmatpush.bf16.msra.mxu0 %v1682_v16  ;;  %v1725_v51 = vld [vmem:[%s2233_s1 + $0x170] sm:$0xff]  ;;  %v1740_v54 = vld [vmem:[%s2233_s1 + $0x1e8] sm:$0xff]  ;;  %v1739_v58 = vld [vmem:[%s2233_s1 + $0x1e0] sm:$0xff] }
  0x13   :  { %940 = vmatpush.bf16.msra.mxu2 %v1698_v17  ;;  %v1724_v55 = vld [vmem:[%s2233_s1 + $0x168] sm:$0xff]  ;;  %v1723_v59 = vld [vmem:[%s2233_s1 + $0x160] sm:$0xff]  ;;  %v1714_v60 = vld [vmem:[%s2233_s1 + $0x118] sm:$0xff] }
  0x14   :  { %954 = vmatpush.bf16.msra.mxu3 %v1706_v18  ;;  %v1730_v61 = vld [vmem:[%s2233_s1 + $0x198] sm:$0xff]  ;;  %v1713_v0 = vld [vmem:[%s2233_s1 + $0x110] sm:$0xff]  ;;  %v1712_v4 = vld [vmem:[%s2233_s1 + $0x108] sm:$0xff] }
  0x15   :  { %926 = vmatpush.bf16.msra.mxu1 %v1690_v19  ;;  %v1738_v62 = vld [vmem:[%s2233_s1 + $0x1d8] sm:$0xff]  ;;  %v1729_v1 = vld [vmem:[%s2233_s1 + $0x190] sm:$0xff]  ;;  %v1728_v5 = vld [vmem:[%s2233_s1 + $0x188] sm:$0xff] }
  0x16   :  { %913 = vmatpush.bf16.msra.mxu0 %v1681_v20  ;;  %v1722_v63 = vld [vmem:[%s2233_s1 + $0x158] sm:$0xff]  ;;  %v1737_v2 = vld [vmem:[%s2233_s1 + $0x1d0] sm:$0xff]  ;;  %v1736_v6 = vld [vmem:[%s2233_s1 + $0x1c8] sm:$0xff] }
  0x17   :  { %941 = vmatpush.bf16.msra.mxu2 %v1697_v21  ;;  %v1721_v3 = vld [vmem:[%s2233_s1 + $0x150] sm:$0xff]  ;;  %v1720_v7 = vld [vmem:[%s2233_s1 + $0x148] sm:$0xff]  ;;  %v1711_v8 = vld [vmem:[%s2233_s1 + $0x100] sm:$0xff] }
  0x18   :  { %955 = vmatpush.bf16.msra.mxu3 %v1705_v22  ;;  %v1727_v9 = vld [vmem:[%s2233_s1 + $0x180] sm:$0xff]  ;;  %v1750_v11 = vld [vmem:[%s2233_s1 + $0x238] sm:$0xff]  ;;  %v1199_v13 = vld [vmem:[%s2235_s0 + $0x10] sm:$0xf] }
  0x19   :  { %927 = vmatpush.bf16.msra.mxu1 %v1689_v23  ;;  %v1735_v10 = vld [vmem:[%s2233_s1 + $0x1c0] sm:$0xff]  ;;  %v1766_v12 = vld [vmem:[%s2233_s1 + $0x2b8] sm:$0xff]  ;;  %v1675_v16 = vld [vmem:[%s2235_s0 + $0x48] sm:$0xf0] }
  0x1a   :  { %914 = vmatpush.bf16.msra.mxu0 %v1680_v24  ;;  %v1674_v14 = vld [vmem:[%s2235_s0 + $0x40] sm:$0xf0]  ;;  %v1207_v15 = vld [vmem:[%s2235_s0 + $0x18] sm:$0xf]  ;;  %v1669_v18 = vld [vmem:[%s2235_s0 + $0x1c] sm:$0xf] }
  0x1b   :  { %942 = vmatpush.bf16.msra.mxu2 %v1696_v25  ;;  %v1774_v17 = vld [vmem:[%s2233_s1 + $0x2f8] sm:$0xff]  ;;  %v1209_v19 = vld [vmem:[%s2235_s0 + $0x4c] sm:$0xf0]  ;;  %v1719_v20 = vld [vmem:[%s2233_s1 + $0x140] sm:$0xff]  ;;  %v1200_v23 = vor.u32 %v1674_v14, %v1199_v13  ;;  %v1208_v24 = vor.u32 %v1675_v16, %v1207_v15 }
  0x1c   :  { %956 = vmatpush.bf16.msra.mxu3 %v1704_v26  ;;  %v1668_v21 = vld [vmem:[%s2235_s0 + $0x14] sm:$0xf]  ;;  %v1201_v22 = vld [vmem:[%s2235_s0 + $0x44] sm:$0xf0]  ;;  %v1758_v25 = vld [vmem:[%s2233_s1 + $0x278] sm:$0xff]  ;;  %v1212_v26 = vor.u32 %v1669_v18, %v1209_v19 }
  0x1d   :  { %928 = vmatpush.bf16.msra.mxu1 %v1688_v27  ;;  %v1204_v27 = vor.u32 %v1668_v21, %v1201_v22  ;;  %v1748_v32 = vld [vmem:[%s2233_s1 + $0x228] sm:$0xff]  ;;  %v1747_v36 = vld [vmem:[%s2233_s1 + $0x220] sm:$0xff]  ;;  %v1745_v44 = vld [vmem:[%s2233_s1 + $0x210] sm:$0xff] }
  0x1e   :  { %915 = vmatpush.bf16.msra.mxu0 %v1679_v28  ;;  %v1749_v28 = vld [vmem:[%s2233_s1 + $0x230] sm:$0xff]  ;;  %v1764_v33 = vld [vmem:[%s2233_s1 + $0x2a8] sm:$0xff]  ;;  %v1771_v38 = vld [vmem:[%s2233_s1 + $0x2e0] sm:$0xff] }
  0x1f   :  { %943 = vmatpush.bf16.msra.mxu2 %v1695_v29  ;;  %v1765_v29 = vld [vmem:[%s2233_s1 + $0x2b0] sm:$0xff]  ;;  %v1756_v35 = vld [vmem:[%s2233_s1 + $0x268] sm:$0xff]  ;;  %v1755_v39 = vld [vmem:[%s2233_s1 + $0x260] sm:$0xff] }
  0x20   :  { %957 = vmatpush.bf16.msra.mxu3 %v1703_v30  ;;  %v1773_v30 = vld [vmem:[%s2233_s1 + $0x2f0] sm:$0xff]  ;;  %v1786_v13 = vld [vmem:[%s2237_s3 + $0x38] sm:$0xff]  ;;  %v1784_v18 = vld [vmem:[%s2237_s3 + $0x28] sm:$0xff] }
  0x21   :  { %929 = vmatpush.bf16.msra.mxu1 %v1687_v40  ;;  %916 = vmatmul.bf16.vlgmr.msra.gmra.mxu0 %v1184_v41  ;;  %v1746_v40 = vld [vmem:[%s2233_s1 + $0x218] sm:$0xff]  ;;  %v1761_v45 = vld [vmem:[%s2233_s1 + $0x290] sm:$0xff]  ;;  %v1783_v22 = vld [vmem:[%s2237_s3 + $0x20] sm:$0xff] }
  0x22   :  { %964 = vmatpush.bf16.msrb.mxu0 %v1718_v31  ;;  %944 = vmatmul.bf16.vlgmr.msra.gmra.mxu2 %v1192_v43  ;;  %v1757_v31 = vld [vmem:[%s2233_s1 + $0x270] sm:$0xff]  ;;  %v1762_v41 = vld [vmem:[%s2233_s1 + $0x298] sm:$0xff] }
  0x23   :  { %992 = vmatpush.bf16.msrb.mxu2 %v1734_v34  ;;  %958 = vmatmul.bf16.vlgmr.msra.gmra.mxu3 %v1196_v47  ;;  %v1772_v34 = vld [vmem:[%s2233_s1 + $0x2e8] sm:$0xff]  ;;  %v1754_v43 = vld [vmem:[%s2233_s1 + $0x258] sm:$0xff]  ;;  %v1753_v47 = vld [vmem:[%s2233_s1 + $0x250] sm:$0xff] }
  0x24   :  { %1006 = vmatpush.bf16.msrb.mxu3 %v1742_v37  ;;  %930 = vmatmul.bf16.vlgmr.msra.gmra.mxu1 %v1188_v50  ;;  %v1763_v37 = vld [vmem:[%s2233_s1 + $0x2a0] sm:$0xff]  ;;  %v1768_v50 = vld [vmem:[%s2233_s1 + $0x2c8] sm:$0xff]  ;;  %v1785_v15 = vld [vmem:[%s2237_s3 + $0x30] sm:$0xff] }
  0x25   :  { %978 = vmatpush.bf16.msrb.mxu1 %v1726_v42  ;;  %v1770_v42 = vld [vmem:[%s2233_s1 + $0x2d8] sm:$0xff] }
  0x26   :  { %965 = vmatpush.bf16.msrb.mxu0 %v1717_v46  ;;  %v1769_v46 = vld [vmem:[%s2233_s1 + $0x2d0] sm:$0xff] }
  0x27   :  { %993 = vmatpush.bf16.msrb.mxu2 %v1733_v48  ;;  %v1744_v48 = vld [vmem:[%s2233_s1 + $0x208] sm:$0xff] }
  0x28   :  { %1007 = vmatpush.bf16.msrb.mxu3 %v1741_v49  ;;  %v1760_v49 = vld [vmem:[%s2233_s1 + $0x288] sm:$0xff] }
  0x29   :  { %979 = vmatpush.bf16.msrb.mxu1 %v1725_v51  ;;  %v1752_v51 = vld [vmem:[%s2233_s1 + $0x248] sm:$0xff] }
  0x2a   :  { %966 = vmatpush.bf16.msrb.mxu0 %v1716_v52  ;;  %v1743_v52 = vld [vmem:[%s2233_s1 + $0x200] sm:$0xff] }
  0x2b   :  { %994 = vmatpush.bf16.msrb.mxu2 %v1732_v53  ;;  %v1759_v53 = vld [vmem:[%s2233_s1 + $0x280] sm:$0xff] }
  0x2c   :  { %1008 = vmatpush.bf16.msrb.mxu3 %v1740_v54  ;;  %v1767_v54 = vld [vmem:[%s2233_s1 + $0x2c0] sm:$0xff] }
  0x2d   :  { %980 = vmatpush.bf16.msrb.mxu1 %v1724_v55  ;;  %v1215_v55 = vld [vmem:[%s2235_s0 + $0x20] sm:$0xf] }
  0x2e   :  { %967 = vmatpush.bf16.msrb.mxu0 %v1715_v56  ;;  %v1676_v56 = vld [vmem:[%s2235_s0 + $0x50] sm:$0xf0] }
  0x2f   :  { %995 = vmatpush.bf16.msrb.mxu2 %v1731_v57  ;;  %v1223_v57 = vld [vmem:[%s2235_s0 + $0x28] sm:$0xf] }
  0x30   :  { %1009 = vmatpush.bf16.msrb.mxu3 %v1739_v58  ;;  %v1677_v58 = vld [vmem:[%s2235_s0 + $0x58] sm:$0xf0] }
  0x31   :  { %981 = vmatpush.bf16.msrb.mxu1 %v1723_v59  ;;  %v1671_v59 = vld [vmem:[%s2235_s0 + $0x2c] sm:$0xf] }
  0x32   :  { %968 = vmatpush.bf16.msrb.mxu0 %v1714_v60  ;;  %v1225_v60 = vld [vmem:[%s2235_s0 + $0x5c] sm:$0xf0] }
  0x33   :  { %996 = vmatpush.bf16.msrb.mxu2 %v1730_v61  ;;  %v1778_v61 = vld [vmem:[%s2233_s1 + $0x318] sm:$0xff] }
  0x34   :  { %1010 = vmatpush.bf16.msrb.mxu3 %v1738_v62  ;;  %v1751_v62 = vld [vmem:[%s2233_s1 + $0x240] sm:$0xff] }
  0x35   :  { %982 = vmatpush.bf16.msrb.mxu1 %v1722_v63  ;;  %v1216_v63 = vor.u32 %v1676_v56, %v1215_v55 }
  0x36   :  { %969 = vmatpush.bf16.msrb.mxu0 %v1713_v0  ;;  %v1670_v0 = vld [vmem:[%s2235_s0 + $0x24] sm:$0xf] }
  0x37   :  { %997 = vmatpush.bf16.msrb.mxu2 %v1729_v1  ;;  %v1217_v1 = vld [vmem:[%s2235_s0 + $0x54] sm:$0xf0] }
  0x38   :  { %1011 = vmatpush.bf16.msrb.mxu3 %v1737_v2  ;;  %v1224_v2 = vor.u32 %v1677_v58, %v1223_v57 }
  0x39   :  { %983 = vmatpush.bf16.msrb.mxu1 %v1721_v3  ;;  %v1228_v3 = vor.u32 %v1671_v59, %v1225_v60 }
  0x3a   :  { %970 = vmatpush.bf16.msrb.mxu0 %v1712_v4  ;;  %v1220_v4 = vor.u32 %v1670_v0, %v1217_v1 }
  0x3b   :  { %998 = vmatpush.bf16.msrb.mxu2 %v1728_v5  ;;  %v1777_v5 = vld [vmem:[%s2233_s1 + $0x310] sm:$0xff] }
  0x3c   :  { %1012 = vmatpush.bf16.msrb.mxu3 %v1736_v6  ;;  %v1776_v6 = vld [vmem:[%s2233_s1 + $0x308] sm:$0xff] }
  0x3d   :  { %984 = vmatpush.bf16.msrb.mxu1 %v1720_v7  ;;  %v1775_v7 = vld [vmem:[%s2233_s1 + $0x300] sm:$0xff] }
  0x3e   :  { %971 = vmatpush.bf16.msrb.mxu0 %v1711_v8  ;;  %v1231_v8 = vld [vmem:[%s2235_s0 + $0x30] sm:$0xf] }
  0x3f   :  { %999 = vmatpush.bf16.msrb.mxu2 %v1727_v9  ;;  %v1678_v9 = vld [vmem:[%s2235_s0 + $0x60] sm:$0xf0] }
  0x40   :  { %1013 = vmatpush.bf16.msrb.mxu3 %v1735_v10  ;;  %v1232_v10 = vor.u32 %v1678_v9, %v1231_v8 }
  0x41   :  { %985 = vmatpush.bf16.msrb.mxu1 %v1719_v20  ;;  %972 = vmatmul.bf16.vlgmr.msrb.gmra.mxu0 %v1200_v23  ;;  %v1787_v20 = vld [vmem:[%s2234_s2] ss:$0 sm:$0xff] }
  0x42   :  { %1020 = vmatpush.bf16.msra.mxu0 %v1750_v11  ;;  %1000 = vmatmul.bf16.vlgmr.msrb.gmra.mxu2 %v1208_v24 }
  0x43   :  { %1048 = vmatpush.bf16.msra.mxu2 %v1766_v12  ;;  %1014 = vmatmul.bf16.vlgmr.msrb.gmra.mxu3 %v1212_v26 }
  0x44   :  { %1062 = vmatpush.bf16.msra.mxu3 %v1774_v17  ;;  %986 = vmatmul.bf16.vlgmr.msrb.gmra.mxu1 %v1204_v27 }
  0x45   :  { %1034 = vmatpush.bf16.msra.mxu1 %v1758_v25  ;;  %v1782_v25 = vld [vmem:[%s2237_s3 + $0x18] sm:$0xff] }
  0x46   :  { %1021 = vmatpush.bf16.msra.mxu0 %v1749_v28 }
  0x47   :  { %1049 = vmatpush.bf16.msra.mxu2 %v1765_v29 }
  0x48   :  { %1063 = vmatpush.bf16.msra.mxu3 %v1773_v30  ;;  %v1781_v30 = vld [vmem:[%s2237_s3 + $0x10] sm:$0xff] }
  0x49   :  { %1035 = vmatpush.bf16.msra.mxu1 %v1757_v31 }
  0x4a   :  { %1022 = vmatpush.bf16.msra.mxu0 %v1748_v32 }
  0x4b   :  { %1050 = vmatpush.bf16.msra.mxu2 %v1764_v33 }
  0x4c   :  { %1064 = vmatpush.bf16.msra.mxu3 %v1772_v34  ;;  %v1780_v34 = vld [vmem:[%s2237_s3 + $0x8] sm:$0xff] }
  0x4d   :  { %1036 = vmatpush.bf16.msra.mxu1 %v1756_v35 }
  0x4e   :  { %1023 = vmatpush.bf16.msra.mxu0 %v1747_v36 }
  0x4f   :  { %1051 = vmatpush.bf16.msra.mxu2 %v1763_v37 }
  0x50   :  { %1065 = vmatpush.bf16.msra.mxu3 %v1771_v38 }
  0x51   :  { %1037 = vmatpush.bf16.msra.mxu1 %v1755_v39  ;;  %v1779_v39 = vld [vmem:[%s2237_s3] sm:$0xff] }
  0x52   :  { %1024 = vmatpush.bf16.msra.mxu0 %v1746_v40 }
  0x53   :  { %1052 = vmatpush.bf16.msra.mxu2 %v1762_v41 }
  0x54   :  { %1066 = vmatpush.bf16.msra.mxu3 %v1770_v42 }
  0x55   :  { %1038 = vmatpush.bf16.msra.mxu1 %v1754_v43 }
  0x56   :  { %1025 = vmatpush.bf16.msra.mxu0 %v1745_v44 }
  0x57   :  { %1053 = vmatpush.bf16.msra.mxu2 %v1761_v45 }
  0x58   :  { %1067 = vmatpush.bf16.msra.mxu3 %v1769_v46 }
  0x59   :  { %1039 = vmatpush.bf16.msra.mxu1 %v1753_v47 }
  0x5a   :  { %1026 = vmatpush.bf16.msra.mxu0 %v1744_v48 }
  0x5b   :  { %1054 = vmatpush.bf16.msra.mxu2 %v1760_v49 }
  0x5c   :  { %1068 = vmatpush.bf16.msra.mxu3 %v1768_v50 }
  0x5d   :  { %1040 = vmatpush.bf16.msra.mxu1 %v1752_v51 }
  0x5e   :  { %1027 = vmatpush.bf16.msra.mxu0 %v1743_v52 }
  0x5f   :  { %1055 = vmatpush.bf16.msra.mxu2 %v1759_v53 }
  0x60   :  { %1069 = vmatpush.bf16.msra.mxu3 %v1767_v54 }
  0x61   :  { %1041 = vmatpush.bf16.msra.mxu1 %v1751_v62  ;;  %1028 = vmatmul.bf16.vlgmr.msra.gmra.mxu0 %v1216_v63 }
  0x62   :  { %1080 = vmatpush.bf16.msrb.mxu0 %v1778_v61  ;;  %1056 = vmatmul.bf16.vlgmr.msra.gmra.mxu2 %v1224_v2 }
  0x63   :  { %1070 = vmatmul.bf16.vlgmr.msra.gmra.mxu3 %v1228_v3 }
  0x64   :  { %1042 = vmatmul.bf16.vlgmr.msra.gmra.mxu1 %v1220_v4 }
  0x65   :  { %1161 = vmatpush.bf16.msrb.mxu1 %v1786_v13 }
  0x66   :  { %1081 = vmatpush.bf16.msrb.mxu0 %v1777_v5 }
  0x69   :  { %1162 = vmatpush.bf16.msrb.mxu1 %v1785_v15 }
  0x6a   :  { %1082 = vmatpush.bf16.msrb.mxu0 %v1776_v6 }
  0x6d   :  { %1163 = vmatpush.bf16.msrb.mxu1 %v1784_v18 }
  0x6e   :  { %1083 = vmatpush.bf16.msrb.mxu0 %v1775_v7 }
  0x71   :  { %1633 = vmatmul.msk.bf16.vlgmr.msrb.gmra.mxu0 %vm904_vm0, %v1232_v10  ;;  %1164 = vmatpush.bf16.msrb.mxu1 %v1783_v22 }
  0x75   :  { %1165 = vmatpush.bf16.msrb.mxu1 %v1782_v25 }
  0x79   :  { %1166 = vmatpush.bf16.msrb.mxu1 %v1781_v30 }
  0x7d   :  { %1167 = vmatpush.bf16.msrb.mxu1 %v1780_v34 }
  0x81   :  { %1168 = vmatpush.bf16.msrb.mxu1 %v1779_v39 }
  0x9e   :  { %v917_v11 = vpop.f32.mrf.mxu0 }
  0x9f   :  { %v918_v23 = vadd.f32 %v1787_v20, %v917_v11  ;;  %v1788_v11 = vld [vmem:[%s2236_s4] ss:$0 sm:$0xff] }
  0xa1   :  { %v931_v12 = vpop.f32.mrf.mxu1 }
  0xa2   :  { %v932_v27 = vadd.f32 %v931_v12, %v918_v23 }
  0xa5   :  { %v945_v14 = vpop.f32.mrf.mxu2 }
  0xa6   :  { %v919_v16 = vpop.f32.mrf.mxu0  ;;  %v959_v17 = vpop.f32.mrf.mxu3  ;;  %v946_v31 = vadd.f32 %v945_v14, %v932_v27 }
  0xa7   :  { %v920_v29 = vadd.f32 %v1787_v20, %v919_v16 }
  0xa8   :  { %v960_v36 = vadd.f32 %v959_v17, %v946_v31 }
  0xa9   :  { %v933_v19 = vpop.f32.mrf.mxu1 }
  0xaa   :  { %v934_v33 = vadd.f32 %v933_v19, %v920_v29 }
  0xad   :  { %v947_v21 = vpop.f32.mrf.mxu2 }
  0xae   :  { %v961_v26 = vpop.f32.mrf.mxu3  ;;  %v948_v38 = vadd.f32 %v947_v21, %v934_v33 }
  0xb0   :  { %v962_v42 = vadd.f32 %v961_v26, %v948_v38 }
  0xbe   :  { %v973_v24 = vpop.f32.mrf.mxu0 }
  0xbf   :  { %v974_v41 = vadd.f32 %v973_v24, %v960_v36 }
  0xc1   :  { %v987_v28 = vpop.f32.mrf.mxu1 }
  0xc2   :  { %v988_v45 = vadd.f32 %v987_v28, %v974_v41 }
  0xc5   :  { %v1001_v32 = vpop.f32.mrf.mxu2 }
  0xc6   :  { %v975_v35 = vpop.f32.mrf.mxu0  ;;  %v1015_v37 = vpop.f32.mrf.mxu3  ;;  %v1002_v49 = vadd.f32 %v1001_v32, %v988_v45 }
  0xc7   :  { %v976_v46 = vadd.f32 %v975_v35, %v962_v42 }
  0xc8   :  { %v1016_v54 = vadd.f32 %v1015_v37, %v1002_v49 }
  0xc9   :  { %v989_v40 = vpop.f32.mrf.mxu1 }
  0xca   :  { %v990_v50 = vadd.f32 %v989_v40, %v976_v46 }
  0xcd   :  { %v1003_v43 = vpop.f32.mrf.mxu2 }
  0xce   :  { %v1017_v47 = vpop.f32.mrf.mxu3  ;;  %v1004_v51 = vadd.f32 %v1003_v43, %v990_v50 }
  0xd0   :  { %v1018_v55 = vadd.f32 %v1017_v47, %v1004_v51 }
  0xde   :  { %v1029_v44 = vpop.f32.mrf.mxu0 }
  0xdf   :  { %v1030_v56 = vadd.f32 %v1029_v44, %v1016_v54 }
  0xe1   :  { %v1043_v48 = vpop.f32.mrf.mxu1 }
  0xe2   :  { %v1044_v60 = vadd.f32 %v1043_v48, %v1030_v56 }
  0xe5   :  { %v1057_v52 = vpop.f32.mrf.mxu2 }
  0xe6   :  { %v1031_v53 = vpop.f32.mrf.mxu0  ;;  %v1071_v57 = vpop.f32.mrf.mxu3  ;;  %v1058_v63 = vadd.f32 %v1057_v52, %v1044_v60 }
  0xe7   :  { %v1032_v58 = vadd.f32 %v1031_v53, %v1018_v55 }
  0xe8   :  { %v1072_v2 = vadd.f32 %v1071_v57, %v1058_v63 }
  0xe9   :  { %v1045_v59 = vpop.f32.mrf.mxu1 }
  0xea   :  { %v1046_v0 = vadd.f32 %v1045_v59, %v1032_v58 }
  0xed   :  { %v1059_v61 = vpop.f32.mrf.mxu2 }
  0xee   :  { %v1085_v62 = vpop.f32.mrf.mxu0  ;;  %v1060_v1 = vadd.f32 %v1059_v61, %v1046_v0  ;;  %v1073_v3 = vpop.f32.mrf.mxu3 }
  0xef   :  { %v1086_v5 = vadd.f32 %v1085_v62, %v1072_v2 }
  0xf0   :  { %v1074_v4 = vadd.f32 %v1073_v3, %v1060_v1 }
  0xf1   :  { %v1090_v8 = vmax.f32 %v1086_v5, 0.0 }
  0xf6   :  { %v1087_v6 = vpop.f32.mrf.mxu0 }
  0xf7   :  { %v1088_v7 = vadd.f32 %v1087_v6, %v1074_v4 }
  0xf9   :  { %v1091_v9 = vmax.f32 %v1088_v7, 0.0 }
  0xfb   :  { %v1092_v10 = vpack.c.bf16 %v1091_v9, %v1090_v8 }
  0xfd   :  { %1169 = vmatmul.bf16.vlgmr.msrb.gmra.mxu1 %v1092_v10 }
 0x17a   :  { %v1170_v12 = vpop.f32.mrf.mxu1 }
 0x17b   :  { %v1171_v13 = vadd.f32 %v1788_v11, %v1170_v12 }
 0x17d   :  { %1175 = vst [vmem:[%s2238_s5] sm:$0xff] %v1171_v13 }
 0x182   :  { %v1172_v14 = vpop.f32.mrf.mxu1 }
 0x183   :  { %v1173_v15 = vadd.f32 %v1788_v11, %v1172_v14 }
 0x185   :  { %1176 = vst [vmem:[%s2238_s5 + $0x8] sm:$0xff] %v1173_v15 }

</bundles_post_ra>
